<compile_context>
chip_gen: v7x
topology: tpu7x:2x2x1
jax: 0.10.0
libtpu: 0.0.40
codegen_flags: <defaults>
</compile_context>

<pallas_src>
import functools

import jax
import jax.numpy as jnp
from jax import lax
from jax.experimental import pallas as pl
from jax.experimental.pallas import tpu as pltpu


def _attention_branch_kernel(xs_ref, w13_ref, w2_ref, b2_ref, w4_hbm_ref,
                             out_ref, w4_vmem, w4_sem, *, H, W, C, BBLK):
    # xs_ref     : (3, BBLK, H+2, W*C)  dx-pre-shifted, row-padded, lane-packed input
    # w13_ref    : (9*W*C, 2*W*C)       K-concatenated block-diag [k1 | k3] weights
    # w2_ref     : (W*C, W*C)           block-diag 1x1 weight
    # b2_ref     : (1, W*C)             bias tiled per pixel
    # w4_hbm_ref : (9*W*C, W*C)         k4 weights left in HBM (manual DMA)
    # out_ref    : (BBLK, H, W*C)
    # w4_vmem    : VMEM scratch (9*W*C, W*C); w4_sem: DMA semaphore
    WC = W * C
    M = BBLK * H

    # Kick off the w4 weight DMA immediately; it is not needed until after the
    # k1/k3/k2/sigmoid phase, so its load is hidden behind that compute.
    w4_copy = pltpu.make_async_copy(w4_hbm_ref, w4_vmem, w4_sem)
    w4_copy.start()

    # ---- fused k1 || k3 : build one K-concatenated LHS, then ONE dot ----------
    # Each tap is an aligned, full-lane row slice of a dx-pre-shifted plane.
    xplanes = [xs_ref[dx] for dx in range(3)]            # 3 x (BBLK, H+2, WC)
    taps = []
    for dy in range(3):
        for dx in range(3):                              # tap order t = 3*dy + dx
            taps.append(xplanes[dx][:, dy:dy + H, :].reshape(M, WC))
    lhs13 = jnp.concatenate(taps, axis=1)                # (M, 9*WC)

    acc13 = jnp.dot(lhs13, w13_ref[...], preferred_element_type=jnp.float32)
    k1 = acc13[:, :WC]                                   # 128-aligned lane slices
    k3 = acc13[:, WC:]

    # ---- k1 -> LeakyReLU(0.2) -> k2 (1x1 + bias) -> sigmoid -------------------
    y = jnp.where(k1 >= 0.0, k1, 0.2 * k1)
    y = jnp.dot(y, w2_ref[...], preferred_element_type=jnp.float32) + b2_ref[...]
    y = jax.nn.sigmoid(y)

    inner = k3 * y                                       # (M, WC)

    # ---- k4 taps built fully in vregs (no padded scratch round-trip) ----------
    # Row zero-padding via concat; dx (+/-1 pixel == +/-C lanes) via pltpu.roll
    # on the lane axis with broadcasted_iota border masks.
    inner3 = inner.reshape(BBLK, H, WC)
    zrow = jnp.zeros((BBLK, 1, WC), jnp.float32)
    rpad = jnp.concatenate([zrow, inner3, zrow], axis=1)  # (BBLK, H+2, WC)
    lane = lax.broadcasted_iota(jnp.int32, (M, WC), 1)

    taps4 = []
    for dy in range(3):
        r = rpad[:, dy:dy + H, :].reshape(M, WC)          # row-shifted (dy-1)
        for dx in range(3):
            if dx == 1:
                t = r
            elif dx == 0:
                # needs pixel w-1: roll right by C lanes, zero the first C lanes
                t = jnp.where(lane >= C, pltpu.roll(r, C, axis=1), 0.0)
            else:
                # needs pixel w+1: roll left by C lanes, zero the last C lanes
                t = jnp.where(lane < WC - C, pltpu.roll(r, WC - C, axis=1), 0.0)
            taps4.append(t)
    lhs4 = jnp.concatenate(taps4, axis=1)                 # (M, 9*WC)

    # ---- k4: single dot against the (now resident) block-diag weights ---------
    w4_copy.wait()
    acc4 = jnp.dot(lhs4, w4_vmem[...], preferred_element_type=jnp.float32)

    out_ref[...] = acc4.reshape(BBLK, H, WC)              # lane-dense full store


def pack_attention_branch_weights(w1, w2, b2, w3, w4, W):
    """One-time weight pre-packing (call OUTSIDE the jitted forward).

    w1/w3/w4: (3,3,Cin,Cout) HWIO; w2: (Cin,Cout); b2: (Cout,).
    Returns (w13_big, w2_big, b2_tiled, w4_big) in the kernel's block-diagonal,
    K-concatenated layout.  In a real model this runs once at parameter load.
    """
    C = w1.shape[2]
    WC = W * C
    eye_w = jnp.eye(W, dtype=jnp.float32)

    def blockdiag(w_cc):                     # (Cin, Cout) -> (W*Cin, W*Cout)
        return jnp.kron(eye_w, w_cc.astype(jnp.float32))

    # Tap order t = 3*dy + dx must match the kernel's LHS concatenation order.
    w13_big = jnp.concatenate([
        jnp.concatenate([blockdiag(w1[dy, dx]), blockdiag(w3[dy, dx])], axis=1)
        for dy in range(3) for dx in range(3)
    ], axis=0)                                            # (9*WC, 2*WC)
    w4_big = jnp.concatenate([blockdiag(w4[dy, dx])
                              for dy in range(3) for dx in range(3)],
                             axis=0)                      # (9*WC, WC)
    w2_big = blockdiag(w2)                                # (WC, WC)
    b2_t = jnp.tile(b2.astype(jnp.float32), W).reshape(1, WC)
    return w13_big, w2_big, b2_t, w4_big


def attention_branch(x_nhwc, w13_big, w2_big, b2_t, w4_big, *, bblk=None):
    """x_nhwc: (B,H,W,C) f32; packed weights from pack_attention_branch_weights."""
    B, H, W, C = x_nhwc.shape
    WC = W * C

    # Batch-block: several images per grid step -> M = bblk*H rows per matmul.
    if bblk is None:
        bblk = max(d for d in (8, 4, 2, 1) if B % d == 0)

    # Lane-packed, spatially padded input, pre-shifted along dx so every conv
    # tap inside the kernel is an aligned full-lane (last dim == WC) row slice.
    xpad = jnp.pad(x_nhwc, ((0, 0), (1, 1), (1, 1), (0, 0)))
    xpk = xpad.reshape(B, H + 2, (W + 2) * C)             # contiguous reshape
    xs = jnp.stack([xpk[:, :, dx * C:dx * C + WC] for dx in range(3)],
                   axis=0)                                # (3, B, H+2, WC)

    kernel = functools.partial(_attention_branch_kernel, H=H, W=W, C=C, BBLK=bblk)

    out_packed = pl.pallas_call(
        kernel,
        out_shape=jax.ShapeDtypeStruct((B, H, WC), jnp.float32),
        grid_spec=pltpu.PrefetchScalarGridSpec(
            num_scalar_prefetch=0,
            grid=(B // bblk,),
            in_specs=[
                # Per-step block of bblk pre-shifted padded images.
                pl.BlockSpec((3, bblk, H + 2, WC), lambda b: (0, b, 0, 0)),
                # Grid-invariant weights: constant index_map -> fetched once.
                pl.BlockSpec((9 * WC, 2 * WC), lambda b: (0, 0)),
                pl.BlockSpec((WC, WC), lambda b: (0, 0)),
                pl.BlockSpec((1, WC), lambda b: (0, 0)),
                # w4 stays in HBM; the kernel overlaps its DMA with compute.
                pl.BlockSpec(memory_space=pl.ANY),
            ],
            out_specs=pl.BlockSpec((bblk, H, WC), lambda b: (b, 0, 0)),
            scratch_shapes=[
                pltpu.VMEM((9 * WC, WC), jnp.float32),    # w4 landing buffer
                pltpu.SemaphoreType.DMA,                  # w4 DMA semaphore
            ],
        ),
        compiler_params=pltpu.CompilerParams(
            dimension_semantics=("parallel",)),           # batch axis -> 2 TCs on v7x
    )(xs, w13_big, w2_big, b2_t, w4_big)

    return out_packed.reshape(B, H, W, C)


def _reference(x_nhwc, w1, w2, b2, w3, w4):
    """Plain-JAX reference (NHWC / HWIO) matching the PyTorch forward."""
    dn = ("NHWC", "HWIO", "NHWC")
    conv = functools.partial(lax.conv_general_dilated,
                             window_strides=(1, 1), padding="SAME",
                             dimension_numbers=dn)
    y = conv(x_nhwc, w1)
    y = jnp.where(y >= 0, y, 0.2 * y)
    y = jnp.einsum("bhwc,cd->bhwd", y, w2) + b2
    y = jax.nn.sigmoid(y)
    out = conv(x_nhwc, w3) * y
    return conv(out, w4)


if __name__ == "__main__":
    B, C, H, W = 2, 8, 16, 16   # nf = 8  ->  W*C = 128 = one full lane row
    key = jax.random.PRNGKey(0)
    kx, k1, k2, kb2, k3, k4 = jax.random.split(key, 6)

    # Deterministic synthetic params (PyTorch shapes: OIHW for 3x3, (O,I) + bias
    # for the 1x1), converted to the kernel's HWIO / (Cin,Cout) layout.
    w1_oihw = 0.1 * jax.random.normal(k1, (C, C, 3, 3), jnp.float32)
    w3_oihw = 0.1 * jax.random.normal(k3, (C, C, 3, 3), jnp.float32)
    w4_oihw = 0.1 * jax.random.normal(k4, (C, C, 3, 3), jnp.float32)
    w2_oi = 0.1 * jax.random.normal(k2, (C, C), jnp.float32)
    b2 = 0.1 * jax.random.normal(kb2, (C,), jnp.float32)

    w1 = jnp.transpose(w1_oihw, (2, 3, 1, 0))   # HWIO
    w3 = jnp.transpose(w3_oihw, (2, 3, 1, 0))
    w4 = jnp.transpose(w4_oihw, (2, 3, 1, 0))
    w2 = jnp.transpose(w2_oi, (1, 0))           # (Cin, Cout)

    # PyTorch-convention input (NCHW), transposed to the kernel's NHWC layout.
    x_nchw = jax.random.normal(kx, (B, C, H, W), jnp.float32)
    x_nhwc = jnp.transpose(x_nchw, (0, 2, 3, 1))

    # Weight pre-packing: ONCE, outside the jitted forward (review item 3).
    w13_big, w2_big, b2_t, w4_big = pack_attention_branch_weights(
        w1, w2, b2, w3, w4, W)

    run = jax.jit(attention_branch)
    out = jax.block_until_ready(run(x_nhwc, w13_big, w2_big, b2_t, w4_big))
    ref = jax.block_until_ready(_reference(x_nhwc, w1, w2, b2, w3, w4))

    assert out.shape == (B, H, W, C)
    err = float(jnp.max(jnp.abs(out - ref)))
    assert err < 2e-4, f"Pallas kernel mismatch vs JAX reference: {err}"
    print("KERNEL_OK")
</pallas_src>

<mosaic_0001>
module attributes {stable_mosaic.version = 11 : i64} {
  func.func @_attention_branch_kernel(%arg0: i32, %arg1: memref<3x2x18x128xf32, #tpu.memory_space<vmem>>, %arg2: memref<1152x256xf32, #tpu.memory_space<vmem>>, %arg3: memref<128x128xf32, #tpu.memory_space<vmem>>, %arg4: memref<1x128xf32, #tpu.memory_space<vmem>>, %arg5: memref<1152x128xf32, #tpu.memory_space<any>>, %arg6: memref<2x16x128xf32, #tpu.memory_space<vmem>>, %arg7: memref<1152x128xf32, #tpu.memory_space<vmem>>, %arg8: memref<!tpu.dma_semaphore, #tpu.memory_space<semaphore_mem>>) attributes {dimension_semantics = [#tpu.dimension_semantics<parallel>], iteration_bounds = array<i64: 1>, scalar_prefetch = 0 : i64, scratch_operands = 2 : i64, tpu.core_type = #tpu.core_type<tc>, window_params = [{transform_indices = @transform_0, window_bounds = array<i64: 3, 2, 18, 128>}, {pipeline_mode = #tpu.pipeline_mode<synchronous>, transform_indices = @transform_1, window_bounds = array<i64: 1152, 256>}, {pipeline_mode = #tpu.pipeline_mode<synchronous>, transform_indices = @transform_2, window_bounds = array<i64: 128, 128>}, {pipeline_mode = #tpu.pipeline_mode<synchronous>, transform_indices = @transform_3, window_bounds = array<i64: 1, 128>}, {}, {transform_indices = @transform_5, window_bounds = array<i64: 2, 16, 128>}]} {
    tpu.enqueue_dma source(%arg5 : memref<1152x128xf32, #tpu.memory_space<any>>) target(%arg7 : memref<1152x128xf32, #tpu.memory_space<vmem>>) target_semaphore(%arg8 : memref<!tpu.dma_semaphore, #tpu.memory_space<semaphore_mem>>)
    %c0 = arith.constant 0 : index
    %c0_0 = arith.constant 0 : index
    %c0_1 = arith.constant 0 : index
    %c0_2 = arith.constant 0 : index
    %0 = vector.load %arg1[%c0, %c0_0, %c0_1, %c0_2] : memref<3x2x18x128xf32, #tpu.memory_space<vmem>>, vector<1x2x18x128xf32>
    %1 = vector.shape_cast %0 : vector<1x2x18x128xf32> to vector<2x18x128xf32>
    %c1 = arith.constant 1 : index
    %c0_3 = arith.constant 0 : index
    %c0_4 = arith.constant 0 : index
    %c0_5 = arith.constant 0 : index
    %2 = vector.load %arg1[%c1, %c0_3, %c0_4, %c0_5] : memref<3x2x18x128xf32, #tpu.memory_space<vmem>>, vector<1x2x18x128xf32>
    %3 = vector.shape_cast %2 : vector<1x2x18x128xf32> to vector<2x18x128xf32>
    %c2 = arith.constant 2 : index
    %c0_6 = arith.constant 0 : index
    %c0_7 = arith.constant 0 : index
    %c0_8 = arith.constant 0 : index
    %4 = vector.load %arg1[%c2, %c0_6, %c0_7, %c0_8] : memref<3x2x18x128xf32, #tpu.memory_space<vmem>>, vector<1x2x18x128xf32>
    %5 = vector.shape_cast %4 : vector<1x2x18x128xf32> to vector<2x18x128xf32>
    %6 = vector.extract_strided_slice %1 {offsets = [0, 0, 0], sizes = [2, 16, 128], strides = [1, 1, 1]} : vector<2x18x128xf32> to vector<2x16x128xf32>
    %7 = vector.shape_cast %6 : vector<2x16x128xf32> to vector<32x128xf32>
    %8 = vector.extract_strided_slice %3 {offsets = [0, 0, 0], sizes = [2, 16, 128], strides = [1, 1, 1]} : vector<2x18x128xf32> to vector<2x16x128xf32>
    %9 = vector.shape_cast %8 : vector<2x16x128xf32> to vector<32x128xf32>
    %10 = vector.extract_strided_slice %5 {offsets = [0, 0, 0], sizes = [2, 16, 128], strides = [1, 1, 1]} : vector<2x18x128xf32> to vector<2x16x128xf32>
    %11 = vector.shape_cast %10 : vector<2x16x128xf32> to vector<32x128xf32>
    %12 = vector.extract_strided_slice %1 {offsets = [0, 1, 0], sizes = [2, 16, 128], strides = [1, 1, 1]} : vector<2x18x128xf32> to vector<2x16x128xf32>
    %13 = vector.shape_cast %12 : vector<2x16x128xf32> to vector<32x128xf32>
    %14 = vector.extract_strided_slice %3 {offsets = [0, 1, 0], sizes = [2, 16, 128], strides = [1, 1, 1]} : vector<2x18x128xf32> to vector<2x16x128xf32>
    %15 = vector.shape_cast %14 : vector<2x16x128xf32> to vector<32x128xf32>
    %16 = vector.extract_strided_slice %5 {offsets = [0, 1, 0], sizes = [2, 16, 128], strides = [1, 1, 1]} : vector<2x18x128xf32> to vector<2x16x128xf32>
    %17 = vector.shape_cast %16 : vector<2x16x128xf32> to vector<32x128xf32>
    %18 = vector.extract_strided_slice %1 {offsets = [0, 2, 0], sizes = [2, 16, 128], strides = [1, 1, 1]} : vector<2x18x128xf32> to vector<2x16x128xf32>
    %19 = vector.shape_cast %18 : vector<2x16x128xf32> to vector<32x128xf32>
    %20 = vector.extract_strided_slice %3 {offsets = [0, 2, 0], sizes = [2, 16, 128], strides = [1, 1, 1]} : vector<2x18x128xf32> to vector<2x16x128xf32>
    %21 = vector.shape_cast %20 : vector<2x16x128xf32> to vector<32x128xf32>
    %22 = vector.extract_strided_slice %5 {offsets = [0, 2, 0], sizes = [2, 16, 128], strides = [1, 1, 1]} : vector<2x18x128xf32> to vector<2x16x128xf32>
    %23 = vector.shape_cast %22 : vector<2x16x128xf32> to vector<32x128xf32>
    %24 = tpu.concatenate %7, %9, %11, %13, %15, %17, %19, %21, %23 in 1 : vector<32x128xf32>, vector<32x128xf32>, vector<32x128xf32>, vector<32x128xf32>, vector<32x128xf32>, vector<32x128xf32>, vector<32x128xf32>, vector<32x128xf32>, vector<32x128xf32> -> vector<32x1152xf32>
    %c0_9 = arith.constant 0 : index
    %c0_10 = arith.constant 0 : index
    %25 = vector.load %arg2[%c0_9, %c0_10] : memref<1152x256xf32, #tpu.memory_space<vmem>>, vector<1152x256xf32>
    %cst = arith.constant dense<0.000000e+00> : vector<32x256xf32>
    %26 = tpu.matmul %24, %25, %cst {dimension_numbers = #tpu.dot_dimension_numbers<[1], [0], [0], [1], [0, 0, 1, 1], [], []>} : vector<32x1152xf32>, vector<1152x256xf32>, vector<32x256xf32> -> vector<32x256xf32>
    %27 = vector.extract_strided_slice %26 {offsets = [0, 0], sizes = [32, 128], strides = [1, 1]} : vector<32x256xf32> to vector<32x128xf32>
    %28 = vector.extract_strided_slice %26 {offsets = [0, 128], sizes = [32, 128], strides = [1, 1]} : vector<32x256xf32> to vector<32x128xf32>
    %cst_11 = arith.constant 0.000000e+00 : f32
    %29 = vector.broadcast %cst_11 : f32 to vector<32x128xf32>
    %30 = arith.cmpf oge, %27, %29 : vector<32x128xf32>
    %cst_12 = arith.constant 2.000000e-01 : f32
    %31 = vector.broadcast %cst_12 : f32 to vector<32x128xf32>
    %32 = arith.mulf %31, %27 : vector<32x128xf32>
    %33 = arith.select %30, %27, %32 : vector<32x128xi1>, vector<32x128xf32>
    %c0_13 = arith.constant 0 : index
    %c0_14 = arith.constant 0 : index
    %34 = vector.load %arg3[%c0_13, %c0_14] : memref<128x128xf32, #tpu.memory_space<vmem>>, vector<128x128xf32>
    %cst_15 = arith.constant dense<0.000000e+00> : vector<32x128xf32>
    %35 = tpu.matmul %33, %34, %cst_15 {dimension_numbers = #tpu.dot_dimension_numbers<[1], [0], [0], [1], [0, 0, 1, 1], [], []>} : vector<32x128xf32>, vector<128x128xf32>, vector<32x128xf32> -> vector<32x128xf32>
    %c0_16 = arith.constant 0 : index
    %c0_17 = arith.constant 0 : index
    %36 = vector.load %arg4[%c0_16, %c0_17] : memref<1x128xf32, #tpu.memory_space<vmem>>, vector<1x128xf32>
    %37 = vector.broadcast %36 : vector<1x128xf32> to vector<32x128xf32>
    %38 = arith.addf %35, %37 : vector<32x128xf32>
    %39 = arith.negf %38 : vector<32x128xf32>
    %40 = math.exp %39 : vector<32x128xf32>
    %cst_18 = arith.constant 1.000000e+00 : f32
    %41 = vector.broadcast %cst_18 : f32 to vector<32x128xf32>
    %42 = arith.addf %41, %40 : vector<32x128xf32>
    %43 = arith.divf %41, %42 : vector<32x128xf32>
    %44 = arith.mulf %28, %43 : vector<32x128xf32>
    %45 = vector.shape_cast %44 : vector<32x128xf32> to vector<2x16x128xf32>
    %cst_19 = arith.constant 0.000000e+00 : f32
    %46 = vector.broadcast %cst_19 : f32 to vector<2x1x128xf32>
    %47 = tpu.concatenate %46, %45, %46 in 1 : vector<2x1x128xf32>, vector<2x16x128xf32>, vector<2x1x128xf32> -> vector<2x18x128xf32>
    %48 = tpu.iota {dimensions = array<i32: 1>} : vector<32x128xi32>
    %49 = vector.extract_strided_slice %47 {offsets = [0, 0, 0], sizes = [2, 16, 128], strides = [1, 1, 1]} : vector<2x18x128xf32> to vector<2x16x128xf32>
    %50 = vector.shape_cast %49 : vector<2x16x128xf32> to vector<32x128xf32>
    %c8_i32 = arith.constant 8 : i32
    %51 = vector.broadcast %c8_i32 : i32 to vector<32x128xi32>
    %52 = arith.cmpi sge, %48, %51 : vector<32x128xi32>
    %c8_i32_20 = arith.constant 8 : i32
    %53 = tpu.dynamic_rotate %50 by %c8_i32_20 dim 1 : vector<32x128xf32>, i32 -> vector<32x128xf32>
    %cst_21 = arith.constant 0.000000e+00 : f32
    %54 = vector.broadcast %cst_21 : f32 to vector<32x128xf32>
    %55 = arith.select %52, %53, %54 : vector<32x128xi1>, vector<32x128xf32>
    %c120_i32 = arith.constant 120 : i32
    %56 = vector.broadcast %c120_i32 : i32 to vector<32x128xi32>
    %57 = arith.cmpi slt, %48, %56 : vector<32x128xi32>
    %c120_i32_22 = arith.constant 120 : i32
    %58 = tpu.dynamic_rotate %50 by %c120_i32_22 dim 1 : vector<32x128xf32>, i32 -> vector<32x128xf32>
    %cst_23 = arith.constant 0.000000e+00 : f32
    %59 = vector.broadcast %cst_23 : f32 to vector<32x128xf32>
    %60 = arith.select %57, %58, %59 : vector<32x128xi1>, vector<32x128xf32>
    %61 = vector.extract_strided_slice %47 {offsets = [0, 1, 0], sizes = [2, 16, 128], strides = [1, 1, 1]} : vector<2x18x128xf32> to vector<2x16x128xf32>
    %62 = vector.shape_cast %61 : vector<2x16x128xf32> to vector<32x128xf32>
    %c8_i32_24 = arith.constant 8 : i32
    %63 = vector.broadcast %c8_i32_24 : i32 to vector<32x128xi32>
    %64 = arith.cmpi sge, %48, %63 : vector<32x128xi32>
    %c8_i32_25 = arith.constant 8 : i32
    %65 = tpu.dynamic_rotate %62 by %c8_i32_25 dim 1 : vector<32x128xf32>, i32 -> vector<32x128xf32>
    %cst_26 = arith.constant 0.000000e+00 : f32
    %66 = vector.broadcast %cst_26 : f32 to vector<32x128xf32>
    %67 = arith.select %64, %65, %66 : vector<32x128xi1>, vector<32x128xf32>
    %c120_i32_27 = arith.constant 120 : i32
    %68 = vector.broadcast %c120_i32_27 : i32 to vector<32x128xi32>
    %69 = arith.cmpi slt, %48, %68 : vector<32x128xi32>
    %c120_i32_28 = arith.constant 120 : i32
    %70 = tpu.dynamic_rotate %62 by %c120_i32_28 dim 1 : vector<32x128xf32>, i32 -> vector<32x128xf32>
    %cst_29 = arith.constant 0.000000e+00 : f32
    %71 = vector.broadcast %cst_29 : f32 to vector<32x128xf32>
    %72 = arith.select %69, %70, %71 : vector<32x128xi1>, vector<32x128xf32>
    %73 = vector.extract_strided_slice %47 {offsets = [0, 2, 0], sizes = [2, 16, 128], strides = [1, 1, 1]} : vector<2x18x128xf32> to vector<2x16x128xf32>
    %74 = vector.shape_cast %73 : vector<2x16x128xf32> to vector<32x128xf32>
    %c8_i32_30 = arith.constant 8 : i32
    %75 = vector.broadcast %c8_i32_30 : i32 to vector<32x128xi32>
    %76 = arith.cmpi sge, %48, %75 : vector<32x128xi32>
    %c8_i32_31 = arith.constant 8 : i32
    %77 = tpu.dynamic_rotate %74 by %c8_i32_31 dim 1 : vector<32x128xf32>, i32 -> vector<32x128xf32>
    %cst_32 = arith.constant 0.000000e+00 : f32
    %78 = vector.broadcast %cst_32 : f32 to vector<32x128xf32>
    %79 = arith.select %76, %77, %78 : vector<32x128xi1>, vector<32x128xf32>
    %c120_i32_33 = arith.constant 120 : i32
    %80 = vector.broadcast %c120_i32_33 : i32 to vector<32x128xi32>
    %81 = arith.cmpi slt, %48, %80 : vector<32x128xi32>
    %c120_i32_34 = arith.constant 120 : i32
    %82 = tpu.dynamic_rotate %74 by %c120_i32_34 dim 1 : vector<32x128xf32>, i32 -> vector<32x128xf32>
    %cst_35 = arith.constant 0.000000e+00 : f32
    %83 = vector.broadcast %cst_35 : f32 to vector<32x128xf32>
    %84 = arith.select %81, %82, %83 : vector<32x128xi1>, vector<32x128xf32>
    %85 = tpu.concatenate %55, %50, %60, %67, %62, %72, %79, %74, %84 in 1 : vector<32x128xf32>, vector<32x128xf32>, vector<32x128xf32>, vector<32x128xf32>, vector<32x128xf32>, vector<32x128xf32>, vector<32x128xf32>, vector<32x128xf32>, vector<32x128xf32> -> vector<32x1152xf32>
    tpu.wait_dma2 semaphore(%arg8 : memref<!tpu.dma_semaphore, #tpu.memory_space<semaphore_mem>>) src(%arg5 : memref<1152x128xf32, #tpu.memory_space<any>>) dst(%arg7 : memref<1152x128xf32, #tpu.memory_space<vmem>>)
    %c0_36 = arith.constant 0 : index
    %c0_37 = arith.constant 0 : index
    %86 = vector.load %arg7[%c0_36, %c0_37] : memref<1152x128xf32, #tpu.memory_space<vmem>>, vector<1152x128xf32>
    %cst_38 = arith.constant dense<0.000000e+00> : vector<32x128xf32>
    %87 = tpu.matmul %85, %86, %cst_38 {dimension_numbers = #tpu.dot_dimension_numbers<[1], [0], [0], [1], [0, 0, 1, 1], [], []>} : vector<32x1152xf32>, vector<1152x128xf32>, vector<32x128xf32> -> vector<32x128xf32>
    %88 = vector.shape_cast %87 : vector<32x128xf32> to vector<2x16x128xf32>
    %c0_39 = arith.constant 0 : index
    %c0_40 = arith.constant 0 : index
    %c0_41 = arith.constant 0 : index
    %89 = vector.load %arg6[%c0_39, %c0_40, %c0_41] : memref<2x16x128xf32, #tpu.memory_space<vmem>>, vector<2x16x128xf32>
    tpu.vector_store %arg6[%c0_39, %c0_40, %c0_41], %88 {strides = array<i32>} : memref<2x16x128xf32, #tpu.memory_space<vmem>>, vector<2x16x128xf32>,
    return
  }
  func.func @transform_0(%arg0: i32) -> (i32, i32, i32, i32) {
    %c0_i32 = arith.constant 0 : i32
    %c0_i32_0 = arith.constant 0 : i32
    %c0_i32_1 = arith.constant 0 : i32
    %c0_i32_2 = arith.constant 0 : i32
    return %c0_i32, %arg0, %c0_i32_0, %c0_i32_1 : i32, i32, i32, i32
  }
  func.func @transform_1(%arg0: i32) -> (i32, i32) {
    %c0_i32 = arith.constant 0 : i32
    %c0_i32_0 = arith.constant 0 : i32
    %c0_i32_1 = arith.constant 0 : i32
    return %c0_i32, %c0_i32_0 : i32, i32
  }
  func.func @transform_2(%arg0: i32) -> (i32, i32) {
    %c0_i32 = arith.constant 0 : i32
    %c0_i32_0 = arith.constant 0 : i32
    %c0_i32_1 = arith.constant 0 : i32
    return %c0_i32, %c0_i32_0 : i32, i32
  }
  func.func @transform_3(%arg0: i32) -> (i32, i32) {
    %c0_i32 = arith.constant 0 : i32
    %c0_i32_0 = arith.constant 0 : i32
    %c0_i32_1 = arith.constant 0 : i32
    return %c0_i32, %c0_i32_0 : i32, i32
  }
  func.func @transform_5(%arg0: i32) -> (i32, i32, i32) {
    %c0_i32 = arith.constant 0 : i32
    %c0_i32_0 = arith.constant 0 : i32
    %c0_i32_1 = arith.constant 0 : i32
    return %arg0, %c0_i32, %c0_i32_0 : i32, i32, i32
  }
}

</mosaic_0001>

<bundles_post_ra>
// kernel: attention_branch.1
= control target key start
LH: loop header
LB: loop body
LE: loop exit
PB: predicated region body
PF: predicated region fallthrough
CT: control target
= control target key end

     0   :  { %vm372_vm0 = vcmask 1046528   ;;  %s5260_s0 = inlined_call_operand.vmem [shape: f32[3,2,18,128], index: 0, kind: input, shape index: {}]   ;;  %s5261_s1 = inlined_call_operand.vmem [shape: f32[1152,256], index: 1, kind: input, shape index: {}]   ;;  %s5262_s2 = inlined_call_operand.vmem [shape: f32[128,128], index: 2, kind: input, shape index: {}]   ;;  %s5263_s3 = inlined_call_operand.vmem [shape: f32[1,128], index: 3, kind: input, shape index: {}]   ;;  %s5264_s4 = inlined_call_operand.vmem [shape: f32[1152,128], index: 4, kind: input, shape index: {}]   ;;  %s5265_s5 = inlined_call_operand.vmem [shape: f32[2,16,128], index: 5, kind: output, shape index: {}]  }
   0x1   :  { %v2999_v0 = vld [vmem:[%s5264_s4] sm:$0xff]  ;;  %v3004_v1 = vld [vmem:[%s5264_s4 + $0x8] sm:$0xff]  ;;  %v3009_v2 = vld [vmem:[%s5264_s4 + $0x10] sm:$0xff] }
   0x2   :  { %v3014_v3 = vld [vmem:[%s5264_s4 + $0x18] sm:$0xff]  ;;  %v3019_v4 = vld [vmem:[%s5264_s4 + $0x20] sm:$0xff]  ;;  %v3024_v5 = vld [vmem:[%s5264_s4 + $0x28] sm:$0xff] }
   0x3   :  { %v3029_v6 = vld [vmem:[%s5264_s4 + $0x30] sm:$0xff]  ;;  %v3034_v7 = vld [vmem:[%s5264_s4 + $0x38] sm:$0xff]  ;;  %v3039_v8 = vld [vmem:[%s5264_s4 + $0x40] sm:$0xff] }
   0x4   :  { %v3044_v9 = vld [vmem:[%s5264_s4 + $0x48] sm:$0xff]  ;;  %v3049_v10 = vld [vmem:[%s5264_s4 + $0x50] sm:$0xff]  ;;  %v3054_v11 = vld [vmem:[%s5264_s4 + $0x58] sm:$0xff] }
   0x5   :  { %5270 = vst [vmem:[#allocation6_spill] sm:$0xff] %v3049_v10  ;;  %5271 = vst [vmem:[#allocation7_spill] sm:$0xff] %v3054_v11  ;;  %v3059_v12 = vld [vmem:[%s5264_s4 + $0x60] sm:$0xff]  ;;  %v3064_v13 = vld [vmem:[%s5264_s4 + $0x68] sm:$0xff] }
   0x6   :  { %5272 = vst [vmem:[#allocation8_spill] sm:$0xff] %v3059_v12  ;;  %5273 = vst [vmem:[#allocation9_spill] sm:$0xff] %v3064_v13  ;;  %v3069_v14 = vld [vmem:[%s5264_s4 + $0x70] sm:$0xff]  ;;  %v3074_v15 = vld [vmem:[%s5264_s4 + $0x78] sm:$0xff] }
   0x7   :  { %5274 = vst [vmem:[#allocation10_spill] sm:$0xff] %v3069_v14  ;;  %5275 = vst [vmem:[#allocation11_spill] sm:$0xff] %v3074_v15  ;;  %v3079_v16 = vld [vmem:[%s5264_s4 + $0x80] sm:$0xff]  ;;  %v3084_v17 = vld [vmem:[%s5264_s4 + $0x88] sm:$0xff] }
   0x8   :  { %v3089_v18 = vld [vmem:[%s5264_s4 + $0x90] sm:$0xff]  ;;  %v3094_v19 = vld [vmem:[%s5264_s4 + $0x98] sm:$0xff]  ;;  %v3099_v20 = vld [vmem:[%s5264_s4 + $0xa0] sm:$0xff] }
   0x9   :  { %v3104_v21 = vld [vmem:[%s5264_s4 + $0xa8] sm:$0xff]  ;;  %v3109_v22 = vld [vmem:[%s5264_s4 + $0xb0] sm:$0xff]  ;;  %v3114_v23 = vld [vmem:[%s5264_s4 + $0xb8] sm:$0xff] }
   0xa   :  { %v3119_v24 = vld [vmem:[%s5264_s4 + $0xc0] sm:$0xff]  ;;  %v3124_v25 = vld [vmem:[%s5264_s4 + $0xc8] sm:$0xff]  ;;  %v3129_v26 = vld [vmem:[%s5264_s4 + $0xd0] sm:$0xff] }
   0xb   :  { %v3134_v27 = vld [vmem:[%s5264_s4 + $0xd8] sm:$0xff]  ;;  %v3139_v28 = vld [vmem:[%s5264_s4 + $0xe0] sm:$0xff]  ;;  %v3144_v29 = vld [vmem:[%s5264_s4 + $0xe8] sm:$0xff] }
   0xc   :  { %5276 = vst [vmem:[#allocation12_spill] sm:$0xff] %v3139_v28  ;;  %5277 = vst [vmem:[#allocation13_spill] sm:$0xff] %v3144_v29  ;;  %v3149_v30 = vld [vmem:[%s5264_s4 + $0xf0] sm:$0xff]  ;;  %v3154_v31 = vld [vmem:[%s5264_s4 + $0xf8] sm:$0xff] }
   0xd   :  { %5278 = vst [vmem:[#allocation14_spill] sm:$0xff] %v3149_v30  ;;  %5279 = vst [vmem:[#allocation15_spill] sm:$0xff] %v3154_v31  ;;  %v3159_v32 = vld [vmem:[%s5264_s4 + $0x100] sm:$0xff]  ;;  %v3164_v33 = vld [vmem:[%s5264_s4 + $0x108] sm:$0xff] }
   0xe   :  { %5280 = vst [vmem:[#allocation16_spill] sm:$0xff] %v3159_v32  ;;  %5281 = vst [vmem:[#allocation17_spill] sm:$0xff] %v3164_v33  ;;  %v3169_v34 = vld [vmem:[%s5264_s4 + $0x110] sm:$0xff]  ;;  %v3174_v35 = vld [vmem:[%s5264_s4 + $0x118] sm:$0xff] }
   0xf   :  { %5282 = vst [vmem:[#allocation18_spill] sm:$0xff] %v3169_v34  ;;  %5283 = vst [vmem:[#allocation19_spill] sm:$0xff] %v3174_v35  ;;  %v3179_v36 = vld [vmem:[%s5264_s4 + $0x120] sm:$0xff]  ;;  %v3184_v37 = vld [vmem:[%s5264_s4 + $0x128] sm:$0xff] }
  0x10   :  { %5284 = vst [vmem:[#allocation20_spill] sm:$0xff] %v3179_v36  ;;  %5285 = vst [vmem:[#allocation21_spill] sm:$0xff] %v3184_v37  ;;  %v3189_v38 = vld [vmem:[%s5264_s4 + $0x130] sm:$0xff]  ;;  %v3194_v39 = vld [vmem:[%s5264_s4 + $0x138] sm:$0xff] }
  0x11   :  { %5286 = vst [vmem:[#allocation22_spill] sm:$0xff] %v3189_v38  ;;  %5287 = vst [vmem:[#allocation23_spill] sm:$0xff] %v3194_v39  ;;  %v3199_v40 = vld [vmem:[%s5264_s4 + $0x140] sm:$0xff]  ;;  %v3204_v41 = vld [vmem:[%s5264_s4 + $0x148] sm:$0xff] }
  0x12   :  { %5288 = vst [vmem:[#allocation24_spill] sm:$0xff] %v3199_v40  ;;  %5289 = vst [vmem:[#allocation25_spill] sm:$0xff] %v3204_v41  ;;  %v3209_v42 = vld [vmem:[%s5264_s4 + $0x150] sm:$0xff]  ;;  %v3214_v43 = vld [vmem:[%s5264_s4 + $0x158] sm:$0xff] }
  0x13   :  { %5290 = vst [vmem:[#allocation26_spill] sm:$0xff] %v3209_v42  ;;  %5291 = vst [vmem:[#allocation27_spill] sm:$0xff] %v3214_v43  ;;  %v3219_v44 = vld [vmem:[%s5264_s4 + $0x160] sm:$0xff]  ;;  %v3224_v45 = vld [vmem:[%s5264_s4 + $0x168] sm:$0xff] }
  0x14   :  { %5292 = vst [vmem:[#allocation28_spill] sm:$0xff] %v3219_v44  ;;  %5293 = vst [vmem:[#allocation29_spill] sm:$0xff] %v3224_v45  ;;  %v3229_v46 = vld [vmem:[%s5264_s4 + $0x170] sm:$0xff]  ;;  %v3234_v47 = vld [vmem:[%s5264_s4 + $0x178] sm:$0xff] }
  0x15   :  { %5294 = vst [vmem:[#allocation30_spill] sm:$0xff] %v3229_v46  ;;  %5295 = vst [vmem:[#allocation31_spill] sm:$0xff] %v3234_v47  ;;  %v3239_v48 = vld [vmem:[%s5264_s4 + $0x180] sm:$0xff]  ;;  %v3244_v49 = vld [vmem:[%s5264_s4 + $0x188] sm:$0xff] }
  0x16   :  { %5296 = vst [vmem:[#allocation32_spill] sm:$0xff] %v3239_v48  ;;  %5297 = vst [vmem:[#allocation33_spill] sm:$0xff] %v3244_v49  ;;  %v3249_v50 = vld [vmem:[%s5264_s4 + $0x190] sm:$0xff]  ;;  %v3254_v51 = vld [vmem:[%s5264_s4 + $0x198] sm:$0xff] }
  0x17   :  { %5298 = vst [vmem:[#allocation34_spill] sm:$0xff] %v3249_v50  ;;  %5299 = vst [vmem:[#allocation35_spill] sm:$0xff] %v3254_v51  ;;  %v3259_v52 = vld [vmem:[%s5264_s4 + $0x1a0] sm:$0xff]  ;;  %v3264_v53 = vld [vmem:[%s5264_s4 + $0x1a8] sm:$0xff] }
  0x18   :  { %5300 = vst [vmem:[#allocation36_spill] sm:$0xff] %v3259_v52  ;;  %5301 = vst [vmem:[#allocation37_spill] sm:$0xff] %v3264_v53  ;;  %v3269_v54 = vld [vmem:[%s5264_s4 + $0x1b0] sm:$0xff]  ;;  %v3274_v55 = vld [vmem:[%s5264_s4 + $0x1b8] sm:$0xff] }
  0x19   :  { %5302 = vst [vmem:[#allocation38_spill] sm:$0xff] %v3269_v54  ;;  %5303 = vst [vmem:[#allocation39_spill] sm:$0xff] %v3274_v55  ;;  %v3279_v56 = vld [vmem:[%s5264_s4 + $0x1c0] sm:$0xff]  ;;  %v3284_v57 = vld [vmem:[%s5264_s4 + $0x1c8] sm:$0xff] }
  0x1a   :  { %5304 = vst [vmem:[#allocation40_spill] sm:$0xff] %v3279_v56  ;;  %5305 = vst [vmem:[#allocation41_spill] sm:$0xff] %v3284_v57  ;;  %v3289_v58 = vld [vmem:[%s5264_s4 + $0x1d0] sm:$0xff]  ;;  %v3294_v59 = vld [vmem:[%s5264_s4 + $0x1d8] sm:$0xff] }
  0x1b   :  { %5306 = vst [vmem:[#allocation42_spill] sm:$0xff] %v3289_v58  ;;  %5307 = vst [vmem:[#allocation43_spill] sm:$0xff] %v3294_v59  ;;  %v3299_v60 = vld [vmem:[%s5264_s4 + $0x1e0] sm:$0xff]  ;;  %v3304_v61 = vld [vmem:[%s5264_s4 + $0x1e8] sm:$0xff] }
  0x1c   :  { %5308 = vst [vmem:[#allocation44_spill] sm:$0xff] %v3299_v60  ;;  %5309 = vst [vmem:[#allocation45_spill] sm:$0xff] %v3304_v61  ;;  %v3309_v62 = vld [vmem:[%s5264_s4 + $0x1f0] sm:$0xff]  ;;  %v3314_v63 = vld [vmem:[%s5264_s4 + $0x1f8] sm:$0xff] }
  0x1d   :  { %5310 = vst [vmem:[#allocation46_spill] sm:$0xff] %v3309_v62  ;;  %5311 = vst [vmem:[#allocation47_spill] sm:$0xff] %v3314_v63  ;;  %v3319_v47 = vld [vmem:[%s5264_s4 + $0x200] sm:$0xff]  ;;  %v3324_v46 = vld [vmem:[%s5264_s4 + $0x208] sm:$0xff] }
  0x1e   :  { %5312 = vst [vmem:[#allocation48_spill] sm:$0xff] %v3319_v47  ;;  %5313 = vst [vmem:[#allocation49_spill] sm:$0xff] %v3324_v46  ;;  %v3329_v45 = vld [vmem:[%s5264_s4 + $0x210] sm:$0xff]  ;;  %v3334_v62 = vld [vmem:[%s5264_s4 + $0x218] sm:$0xff] }
  0x1f   :  { %5314 = vst [vmem:[#allocation50_spill] sm:$0xff] %v3329_v45  ;;  %5315 = vst [vmem:[#allocation51_spill] sm:$0xff] %v3334_v62  ;;  %v3339_v63 = vld [vmem:[%s5264_s4 + $0x220] sm:$0xff]  ;;  %v3344_v47 = vld [vmem:[%s5264_s4 + $0x228] sm:$0xff] }
  0x20   :  { %5316 = vst [vmem:[#allocation52_spill] sm:$0xff] %v3339_v63  ;;  %5317 = vst [vmem:[#allocation53_spill] sm:$0xff] %v3344_v47  ;;  %v3349_v46 = vld [vmem:[%s5264_s4 + $0x230] sm:$0xff]  ;;  %v3354_v45 = vld [vmem:[%s5264_s4 + $0x238] sm:$0xff] }
  0x21   :  { %5318 = vst [vmem:[#allocation54_spill] sm:$0xff] %v3349_v46  ;;  %5319 = vst [vmem:[#allocation55_spill] sm:$0xff] %v3354_v45  ;;  %v3359_v62 = vld [vmem:[%s5264_s4 + $0x240] sm:$0xff]  ;;  %v3364_v63 = vld [vmem:[%s5264_s4 + $0x248] sm:$0xff] }
  0x22   :  { %5320 = vst [vmem:[#allocation56_spill] sm:$0xff] %v3359_v62  ;;  %5321 = vst [vmem:[#allocation57_spill] sm:$0xff] %v3364_v63  ;;  %v3369_v47 = vld [vmem:[%s5264_s4 + $0x250] sm:$0xff]  ;;  %v3374_v46 = vld [vmem:[%s5264_s4 + $0x258] sm:$0xff] }
  0x23   :  { %5322 = vst [vmem:[#allocation58_spill] sm:$0xff] %v3369_v47  ;;  %5323 = vst [vmem:[#allocation59_spill] sm:$0xff] %v3374_v46  ;;  %v3379_v45 = vld [vmem:[%s5264_s4 + $0x260] sm:$0xff]  ;;  %v3384_v62 = vld [vmem:[%s5264_s4 + $0x268] sm:$0xff] }
  0x24   :  { %5324 = vst [vmem:[#allocation60_spill] sm:$0xff] %v3379_v45  ;;  %5325 = vst [vmem:[#allocation61_spill] sm:$0xff] %v3384_v62  ;;  %v3389_v63 = vld [vmem:[%s5264_s4 + $0x270] sm:$0xff]  ;;  %v3394_v47 = vld [vmem:[%s5264_s4 + $0x278] sm:$0xff] }
  0x25   :  { %5326 = vst [vmem:[#allocation62_spill] sm:$0xff] %v3389_v63  ;;  %5327 = vst [vmem:[#allocation63_spill] sm:$0xff] %v3394_v47  ;;  %v3399_v46 = vld [vmem:[%s5264_s4 + $0x280] sm:$0xff]  ;;  %v3404_v45 = vld [vmem:[%s5264_s4 + $0x288] sm:$0xff] }
  0x26   :  { %5328 = vst [vmem:[#allocation64_spill] sm:$0xff] %v3399_v46  ;;  %5329 = vst [vmem:[#allocation65_spill] sm:$0xff] %v3404_v45  ;;  %v3409_v62 = vld [vmem:[%s5264_s4 + $0x290] sm:$0xff]  ;;  %v3414_v63 = vld [vmem:[%s5264_s4 + $0x298] sm:$0xff] }
  0x27   :  { %5330 = vst [vmem:[#allocation66_spill] sm:$0xff] %v3409_v62  ;;  %5331 = vst [vmem:[#allocation67_spill] sm:$0xff] %v3414_v63  ;;  %v3419_v47 = vld [vmem:[%s5264_s4 + $0x2a0] sm:$0xff]  ;;  %v3424_v46 = vld [vmem:[%s5264_s4 + $0x2a8] sm:$0xff] }
  0x28   :  { %5332 = vst [vmem:[#allocation68_spill] sm:$0xff] %v3419_v47  ;;  %5333 = vst [vmem:[#allocation69_spill] sm:$0xff] %v3424_v46  ;;  %v3429_v45 = vld [vmem:[%s5264_s4 + $0x2b0] sm:$0xff]  ;;  %v3434_v62 = vld [vmem:[%s5264_s4 + $0x2b8] sm:$0xff] }
  0x29   :  { %5334 = vst [vmem:[#allocation70_spill] sm:$0xff] %v3429_v45  ;;  %5335 = vst [vmem:[#allocation71_spill] sm:$0xff] %v3434_v62  ;;  %v3439_v63 = vld [vmem:[%s5264_s4 + $0x2c0] sm:$0xff]  ;;  %v3444_v47 = vld [vmem:[%s5264_s4 + $0x2c8] sm:$0xff] }
  0x2a   :  { %5336 = vst [vmem:[#allocation72_spill] sm:$0xff] %v3439_v63  ;;  %5337 = vst [vmem:[#allocation73_spill] sm:$0xff] %v3444_v47  ;;  %v3449_v46 = vld [vmem:[%s5264_s4 + $0x2d0] sm:$0xff]  ;;  %v3454_v45 = vld [vmem:[%s5264_s4 + $0x2d8] sm:$0xff] }
  0x2b   :  { %5338 = vst [vmem:[#allocation74_spill] sm:$0xff] %v3449_v46  ;;  %5339 = vst [vmem:[#allocation75_spill] sm:$0xff] %v3454_v45  ;;  %v3459_v62 = vld [vmem:[%s5264_s4 + $0x2e0] sm:$0xff]  ;;  %v3464_v63 = vld [vmem:[%s5264_s4 + $0x2e8] sm:$0xff] }
  0x2c   :  { %5340 = vst [vmem:[#allocation76_spill] sm:$0xff] %v3459_v62  ;;  %5341 = vst [vmem:[#allocation77_spill] sm:$0xff] %v3464_v63  ;;  %v3469_v47 = vld [vmem:[%s5264_s4 + $0x2f0] sm:$0xff]  ;;  %v3474_v46 = vld [vmem:[%s5264_s4 + $0x2f8] sm:$0xff] }
  0x2d   :  { %5342 = vst [vmem:[#allocation78_spill] sm:$0xff] %v3469_v47  ;;  %5343 = vst [vmem:[#allocation79_spill] sm:$0xff] %v3474_v46  ;;  %v3479_v45 = vld [vmem:[%s5264_s4 + $0x300] sm:$0xff]  ;;  %v3484_v62 = vld [vmem:[%s5264_s4 + $0x308] sm:$0xff] }
  0x2e   :  { %5344 = vst [vmem:[#allocation80_spill] sm:$0xff] %v3479_v45  ;;  %5345 = vst [vmem:[#allocation81_spill] sm:$0xff] %v3484_v62  ;;  %v3489_v63 = vld [vmem:[%s5264_s4 + $0x310] sm:$0xff]  ;;  %v3494_v47 = vld [vmem:[%s5264_s4 + $0x318] sm:$0xff] }
  0x2f   :  { %5346 = vst [vmem:[#allocation82_spill] sm:$0xff] %v3489_v63  ;;  %5347 = vst [vmem:[#allocation83_spill] sm:$0xff] %v3494_v47  ;;  %v3499_v46 = vld [vmem:[%s5264_s4 + $0x320] sm:$0xff]  ;;  %v3504_v45 = vld [vmem:[%s5264_s4 + $0x328] sm:$0xff] }
  0x30   :  { %5348 = vst [vmem:[#allocation84_spill] sm:$0xff] %v3499_v46  ;;  %5349 = vst [vmem:[#allocation85_spill] sm:$0xff] %v3504_v45  ;;  %v3509_v62 = vld [vmem:[%s5264_s4 + $0x330] sm:$0xff]  ;;  %v3514_v63 = vld [vmem:[%s5264_s4 + $0x338] sm:$0xff] }
  0x31   :  { %5350 = vst [vmem:[#allocation86_spill] sm:$0xff] %v3509_v62  ;;  %5351 = vst [vmem:[#allocation87_spill] sm:$0xff] %v3514_v63  ;;  %v3519_v47 = vld [vmem:[%s5264_s4 + $0x340] sm:$0xff]  ;;  %v3524_v46 = vld [vmem:[%s5264_s4 + $0x348] sm:$0xff] }
  0x32   :  { %5352 = vst [vmem:[#allocation88_spill] sm:$0xff] %v3519_v47  ;;  %5353 = vst [vmem:[#allocation89_spill] sm:$0xff] %v3524_v46  ;;  %v3529_v45 = vld [vmem:[%s5264_s4 + $0x350] sm:$0xff]  ;;  %v3534_v62 = vld [vmem:[%s5264_s4 + $0x358] sm:$0xff] }
  0x33   :  { %5354 = vst [vmem:[#allocation90_spill] sm:$0xff] %v3529_v45  ;;  %5355 = vst [vmem:[#allocation91_spill] sm:$0xff] %v3534_v62  ;;  %v3539_v63 = vld [vmem:[%s5264_s4 + $0x360] sm:$0xff]  ;;  %v3544_v47 = vld [vmem:[%s5264_s4 + $0x368] sm:$0xff] }
  0x34   :  { %5356 = vst [vmem:[#allocation92_spill] sm:$0xff] %v3539_v63  ;;  %5357 = vst [vmem:[#allocation93_spill] sm:$0xff] %v3544_v47  ;;  %v3549_v46 = vld [vmem:[%s5264_s4 + $0x370] sm:$0xff]  ;;  %v3554_v45 = vld [vmem:[%s5264_s4 + $0x378] sm:$0xff] }
  0x35   :  { %5358 = vst [vmem:[#allocation94_spill] sm:$0xff] %v3549_v46  ;;  %5359 = vst [vmem:[#allocation95_spill] sm:$0xff] %v3554_v45  ;;  %v3559_v62 = vld [vmem:[%s5264_s4 + $0x380] sm:$0xff]  ;;  %v3564_v63 = vld [vmem:[%s5264_s4 + $0x388] sm:$0xff] }
  0x36   :  { %5360 = vst [vmem:[#allocation96_spill] sm:$0xff] %v3559_v62  ;;  %5361 = vst [vmem:[#allocation97_spill] sm:$0xff] %v3564_v63  ;;  %v3569_v47 = vld [vmem:[%s5264_s4 + $0x390] sm:$0xff]  ;;  %v3574_v46 = vld [vmem:[%s5264_s4 + $0x398] sm:$0xff] }
  0x37   :  { %5362 = vst [vmem:[#allocation98_spill] sm:$0xff] %v3569_v47  ;;  %5363 = vst [vmem:[#allocation99_spill] sm:$0xff] %v3574_v46  ;;  %v3579_v45 = vld [vmem:[%s5264_s4 + $0x3a0] sm:$0xff]  ;;  %v3584_v62 = vld [vmem:[%s5264_s4 + $0x3a8] sm:$0xff] }
  0x38   :  { %5364 = vst [vmem:[#allocation100_spill] sm:$0xff] %v3579_v45  ;;  %5365 = vst [vmem:[#allocation101_spill] sm:$0xff] %v3584_v62  ;;  %v3589_v63 = vld [vmem:[%s5264_s4 + $0x3b0] sm:$0xff]  ;;  %v3594_v47 = vld [vmem:[%s5264_s4 + $0x3b8] sm:$0xff] }
  0x39   :  { %5366 = vst [vmem:[#allocation102_spill] sm:$0xff] %v3589_v63  ;;  %5367 = vst [vmem:[#allocation103_spill] sm:$0xff] %v3594_v47  ;;  %v3599_v46 = vld [vmem:[%s5264_s4 + $0x3c0] sm:$0xff]  ;;  %v3604_v45 = vld [vmem:[%s5264_s4 + $0x3c8] sm:$0xff] }
  0x3a   :  { %5368 = vst [vmem:[#allocation104_spill] sm:$0xff] %v3599_v46  ;;  %5369 = vst [vmem:[#allocation105_spill] sm:$0xff] %v3604_v45  ;;  %v3609_v62 = vld [vmem:[%s5264_s4 + $0x3d0] sm:$0xff]  ;;  %v3614_v63 = vld [vmem:[%s5264_s4 + $0x3d8] sm:$0xff] }
  0x3b   :  { %5370 = vst [vmem:[#allocation106_spill] sm:$0xff] %v3609_v62  ;;  %5371 = vst [vmem:[#allocation107_spill] sm:$0xff] %v3614_v63  ;;  %v3619_v47 = vld [vmem:[%s5264_s4 + $0x3e0] sm:$0xff]  ;;  %v3624_v46 = vld [vmem:[%s5264_s4 + $0x3e8] sm:$0xff] }
  0x3c   :  { %5372 = vst [vmem:[#allocation108_spill] sm:$0xff] %v3619_v47  ;;  %5373 = vst [vmem:[#allocation109_spill] sm:$0xff] %v3624_v46  ;;  %v3629_v45 = vld [vmem:[%s5264_s4 + $0x3f0] sm:$0xff]  ;;  %v3634_v62 = vld [vmem:[%s5264_s4 + $0x3f8] sm:$0xff] }
  0x3d   :  { %5374 = vst [vmem:[#allocation110_spill] sm:$0xff] %v3629_v45  ;;  %5375 = vst [vmem:[#allocation111_spill] sm:$0xff] %v3634_v62  ;;  %v3639_v63 = vld [vmem:[%s5264_s4 + $0x400] sm:$0xff]  ;;  %v3644_v47 = vld [vmem:[%s5264_s4 + $0x408] sm:$0xff] }
  0x3e   :  { %v3649_v46 = vld [vmem:[%s5264_s4 + $0x410] sm:$0xff]  ;;  %v3654_v45 = vld [vmem:[%s5264_s4 + $0x418] sm:$0xff]  ;;  %v3659_v62 = vld [vmem:[%s5264_s4 + $0x420] sm:$0xff] }
  0x3f   :  { %v3664_v44 = vld [vmem:[%s5264_s4 + $0x428] sm:$0xff]  ;;  %v3669_v61 = vld [vmem:[%s5264_s4 + $0x430] sm:$0xff]  ;;  %v3674_v60 = vld [vmem:[%s5264_s4 + $0x438] sm:$0xff] }
  0x40   :  { %5376 = vst [vmem:[#allocation112_spill] sm:$0xff] %v3669_v61  ;;  %5377 = vst [vmem:[#allocation113_spill] sm:$0xff] %v3674_v60  ;;  %v3679_v43 = vld [vmem:[%s5264_s4 + $0x440] sm:$0xff]  ;;  %v3684_v42 = vld [vmem:[%s5264_s4 + $0x448] sm:$0xff] }
  0x41   :  { %5378 = vst [vmem:[#allocation114_spill] sm:$0xff] %v3679_v43  ;;  %5379 = vst [vmem:[#allocation115_spill] sm:$0xff] %v3684_v42  ;;  %v3689_v59 = vld [vmem:[%s5264_s4 + $0x450] sm:$0xff]  ;;  %v3694_v58 = vld [vmem:[%s5264_s4 + $0x458] sm:$0xff] }
  0x42   :  { %5380 = vst [vmem:[#allocation116_spill] sm:$0xff] %v3689_v59  ;;  %5381 = vst [vmem:[#allocation117_spill] sm:$0xff] %v3694_v58  ;;  %v3699_v41 = vld [vmem:[%s5264_s4 + $0x460] sm:$0xff]  ;;  %v3704_v40 = vld [vmem:[%s5264_s4 + $0x468] sm:$0xff] }
  0x43   :  { %5382 = vst [vmem:[#allocation118_spill] sm:$0xff] %v3699_v41  ;;  %5383 = vst [vmem:[#allocation119_spill] sm:$0xff] %v3704_v40  ;;  %v3709_v57 = vld [vmem:[%s5264_s4 + $0x470] sm:$0xff]  ;;  %v3714_v56 = vld [vmem:[%s5264_s4 + $0x478] sm:$0xff] }
  0x44   :  { %5384 = vst [vmem:[#allocation120_spill] sm:$0xff] %v3709_v57  ;;  %5385 = vst [vmem:[#allocation121_spill] sm:$0xff] %v3714_v56  ;;  %v535_v39 = vld [vmem:[%s5261_s1 + $0x208] sm:$0xff]  ;;  %v537_v38 = vld [vmem:[%s5261_s1 + $0x218] sm:$0xff] }
  0x45   :  { %v534_v55 = vld [vmem:[%s5261_s1 + $0x200] sm:$0xff]  ;;  %v2476_v54 = vpack.c.bf16 %v537_v38, %v535_v39  ;;  %v536_v37 = vld [vmem:[%s5261_s1 + $0x210] sm:$0xff]  ;;  %v539_v36 = vld [vmem:[%s5261_s1 + $0x228] sm:$0xff] }
  0x46   :  { %v541_v56 = vld [vmem:[%s5261_s1 + $0x238] sm:$0xff]  ;;  %v2478_v57 = vpack.c.bf16 %v536_v37, %v534_v55  ;;  %v538_v52 = vld [vmem:[%s5261_s1 + $0x220] sm:$0xff]  ;;  %v540_v38 = vld [vmem:[%s5261_s1 + $0x230] sm:$0xff] }
  0x47   :  { %v2480_v53 = vpack.c.bf16 %v541_v56, %v539_v36  ;;  %v543_v39 = vld [vmem:[%s5261_s1 + $0x248] sm:$0xff]  ;;  %2477 = vmatprep.subr.bf16.mxu0 %v2476_v54  ;;  %v545_v35 = vld [vmem:[%s5261_s1 + $0x258] sm:$0xff]  ;;  %v2482_v37 = vpack.c.bf16 %v540_v38, %v538_v52  ;;  %v542_v55 = vld [vmem:[%s5261_s1 + $0x240] sm:$0xff] }
  0x48   :  { %2479 = vmatpush1.bf16.msra.mxu0 %v2478_v57  ;;  %v2484_v36 = vpack.c.bf16 %v545_v35, %v543_v39  ;;  %v544_v56 = vld [vmem:[%s5261_s1 + $0x250] sm:$0xff]  ;;  %v547_v54 = vld [vmem:[%s5261_s1 + $0x268] sm:$0xff]  ;;  %v549_v34 = vld [vmem:[%s5261_s1 + $0x278] sm:$0xff] }
  0x49   :  { %2481 = vmatprep.subr.bf16.mxu0 %v2480_v53  ;;  %v2486_v52 = vpack.c.bf16 %v544_v56, %v542_v55  ;;  %v2488_v35 = vpack.c.bf16 %v549_v34, %v547_v54  ;;  %v546_v53 = vld [vmem:[%s5261_s1 + $0x260] sm:$0xff]  ;;  %v548_v57 = vld [vmem:[%s5261_s1 + $0x270] sm:$0xff]  ;;  %v551_v38 = vld [vmem:[%s5261_s1 + $0x288] sm:$0xff] }
  0x4a   :  { %v553_v39 = vld [vmem:[%s5261_s1 + $0x298] sm:$0xff]  ;;  %v552_v55 = vld [vmem:[%s5261_s1 + $0x290] sm:$0xff]  ;;  %v555_v56 = vld [vmem:[%s5261_s1 + $0x2a8] sm:$0xff] }
  0x4b   :  { %v2492_v34 = vpack.c.bf16 %v553_v39, %v551_v38  ;;  %v557_v54 = vld [vmem:[%s5261_s1 + $0x2b8] sm:$0xff]  ;;  %v559_v38 = vld [vmem:[%s5261_s1 + $0x2c8] sm:$0xff]  ;;  %v562_v41 = vld [vmem:[%s5261_s1 + $0x2e0] sm:$0xff] }
  0x4c   :  { %2483 = vmatpush1.bf16.msra.mxu0 %v2482_v37  ;;  %v2490_v37 = vpack.c.bf16 %v548_v57, %v546_v53  ;;  %v554_v53 = vld [vmem:[%s5261_s1 + $0x2a0] sm:$0xff]  ;;  %v556_v57 = vld [vmem:[%s5261_s1 + $0x2b0] sm:$0xff]  ;;  %v561_v39 = vld [vmem:[%s5261_s1 + $0x2d8] sm:$0xff] }
  0x4d   :  { %2485 = vmatprep.subr.bf16.mxu0 %v2484_v36  ;;  %v550_v36 = vld [vmem:[%s5261_s1 + $0x280] sm:$0xff]  ;;  %v564_v51 = vld [vmem:[%s5261_s1 + $0x2f0] sm:$0xff] }
  0x4e   :  { %v3938_v50 = vld [vmem:[%s5260_s0 + $0x10] sm:$0x3] }
  0x50   :  { %2487 = vmatpush1.bf16.msra.mxu0 %v2486_v52  ;;  %v2494_v52 = vpack.c.bf16 %v552_v55, %v550_v36  ;;  %v2500_v36 = vpack.c.bf16 %v561_v39, %v559_v38  ;;  %v560_v55 = vld [vmem:[%s5261_s1 + $0x2d0] sm:$0xff] }
  0x51   :  { %2489 = vmatprep.subr.bf16.mxu0 %v2488_v35  ;;  %v2496_v35 = vpack.c.bf16 %v557_v54, %v555_v56  ;;  %v3803_v56 = vld [vmem:[%s5260_s0] sm:$0xff]  ;;  %v3808_v54 = vld [vmem:[%s5260_s0 + $0x8] sm:$0xff] }
  0x54   :  { %2491 = vmatpush1.bf16.msra.mxu0 %v2490_v37  ;;  %v2498_v37 = vpack.c.bf16 %v556_v57, %v554_v53  ;;  %v373_v53 = vrot.slane %v3803_v56, 1  ;;  %v5266_v57 = vrot.slane %v3808_v54, 1 }
  0x55   :  { %2493 = vmatprep.subr.bf16.mxu0 %v2492_v34  ;;  %v558_v34 = vld [vmem:[%s5261_s1 + $0x2c0] sm:$0xff] }
  0x56   :  { %v2502_v38 = vpack.c.bf16 %v560_v55, %v558_v34  ;;  %v375_v39 = vsel %vm372_vm0, %v373_v53, %v5266_v57  ;;  %v569_v34 = vld [vmem:[%s5261_s1 + $0x318] sm:$0xff]  ;;  %v571_v53 = vld [vmem:[%s5261_s1 + $0x328] sm:$0xff] }
  0x57   :  { %911 = vmatprep.mubr.f32.mxu0 %v375_v39  ;;  %v573_v39 = vld [vmem:[%s5261_s1 + $0x338] sm:$0xff] }
  0x58   :  { %2495 = vmatpush1.bf16.msra.mxu0 %v2494_v52  ;;  %v563_v52 = vld [vmem:[%s5261_s1 + $0x2e8] sm:$0xff]  ;;  %v593_v57 = vld [vmem:[%s5261_s1 + $0x3d8] sm:$0xff] }
  0x59   :  { %2497 = vmatprep.subr.bf16.mxu0 %v2496_v35  ;;  %v565_v35 = vld [vmem:[%s5261_s1 + $0x2f8] sm:$0xff] }
  0x5a   :  { %v2504_v40 = vpack.c.bf16 %v565_v35, %v563_v52  ;;  %v566_v52 = vld [vmem:[%s5261_s1 + $0x300] sm:$0xff]  ;;  %v568_v35 = vld [vmem:[%s5261_s1 + $0x310] sm:$0xff] }
  0x5c   :  { %2499 = vmatpush1.bf16.msra.mxu0 %v2498_v37  ;;  %v567_v37 = vld [vmem:[%s5261_s1 + $0x308] sm:$0xff] }
  0x5d   :  { %2501 = vmatprep.subr.bf16.mxu0 %v2500_v36  ;;  %v2506_v36 = vpack.c.bf16 %v564_v51, %v562_v41  ;;  %v2508_v55 = vpack.c.bf16 %v569_v34, %v567_v37  ;;  %v2510_v41 = vpack.c.bf16 %v568_v35, %v566_v52  ;;  %v570_v51 = vld [vmem:[%s5261_s1 + $0x320] sm:$0xff]  ;;  %v575_v37 = vld [vmem:[%s5261_s1 + $0x348] sm:$0xff]  ;;  %v577_v34 = vld [vmem:[%s5261_s1 + $0x358] sm:$0xff] }
  0x5e   :  { %v574_v52 = vld [vmem:[%s5261_s1 + $0x340] sm:$0xff]  ;;  %v576_v35 = vld [vmem:[%s5261_s1 + $0x350] sm:$0xff] }
  0x60   :  { %2503 = vmatpush1.bf16.msra.mxu0 %v2502_v38  ;;  %v572_v38 = vld [vmem:[%s5261_s1 + $0x330] sm:$0xff] }
  0x61   :  { %2505 = vmatprep.subr.bf16.mxu0 %v2504_v40  ;;  %v2512_v40 = vpack.c.bf16 %v573_v39, %v571_v53  ;;  %v579_v53 = vld [vmem:[%s5261_s1 + $0x368] sm:$0xff]  ;;  %v581_v39 = vld [vmem:[%s5261_s1 + $0x378] sm:$0xff] }
  0x64   :  { %2507 = vmatpush1.bf16.msra.mxu0 %v2506_v36  ;;  %v2514_v36 = vpack.c.bf16 %v572_v38, %v570_v51  ;;  %v578_v51 = vld [vmem:[%s5261_s1 + $0x360] sm:$0xff]  ;;  %v580_v38 = vld [vmem:[%s5261_s1 + $0x370] sm:$0xff] }
  0x65   :  { %2509 = vmatprep.subr.bf16.mxu0 %v2508_v55  ;;  %v2516_v55 = vpack.c.bf16 %v577_v34, %v575_v37  ;;  %v583_v37 = vld [vmem:[%s5261_s1 + $0x388] sm:$0xff]  ;;  %v585_v34 = vld [vmem:[%s5261_s1 + $0x398] sm:$0xff] }
  0x68   :  { %2511 = vmatpush1.bf16.msra.mxu0 %v2510_v41  ;;  %v2518_v41 = vpack.c.bf16 %v576_v35, %v574_v52  ;;  %v582_v52 = vld [vmem:[%s5261_s1 + $0x380] sm:$0xff]  ;;  %v584_v35 = vld [vmem:[%s5261_s1 + $0x390] sm:$0xff] }
  0x69   :  { %2513 = vmatprep.subr.bf16.mxu0 %v2512_v40  ;;  %v2520_v40 = vpack.c.bf16 %v581_v39, %v579_v53  ;;  %v587_v53 = vld [vmem:[%s5261_s1 + $0x3a8] sm:$0xff]  ;;  %v589_v39 = vld [vmem:[%s5261_s1 + $0x3b8] sm:$0xff] }
  0x6c   :  { %2515 = vmatpush1.bf16.msra.mxu0 %v2514_v36  ;;  %v2522_v36 = vpack.c.bf16 %v580_v38, %v578_v51  ;;  %v2528_v51 = vpack.c.bf16 %v589_v39, %v587_v53  ;;  %v586_v38 = vld [vmem:[%s5261_s1 + $0x3a0] sm:$0xff]  ;;  %v595_v53 = vld [vmem:[%s5261_s1 + $0x3e8] sm:$0xff]  ;;  %v597_v39 = vld [vmem:[%s5261_s1 + $0x3f8] sm:$0xff] }
  0x6d   :  { %2517 = vmatprep.subr.bf16.mxu0 %v2516_v55  ;;  %v2524_v55 = vpack.c.bf16 %v585_v34, %v583_v37  ;;  %v588_v37 = vld [vmem:[%s5261_s1 + $0x3b0] sm:$0xff]  ;;  %v591_v34 = vld [vmem:[%s5261_s1 + $0x3c8] sm:$0xff] }
  0x70   :  { %2519 = vmatpush1.bf16.msra.mxu0 %v2518_v41  ;;  %v3896_v41 = vld [vmem:[%s5260_s0 + $0x30] sm:$0xff] }
  0x71   :  { %2521 = vmatprep.subr.bf16.mxu0 %v2520_v40  ;;  %822 = vmatprep.mubr.f32.mxu1 %v3896_v41  ;;  %v2526_v40 = vpack.c.bf16 %v584_v35, %v582_v52  ;;  %v590_v52 = vld [vmem:[%s5261_s1 + $0x3c0] sm:$0xff]  ;;  %v592_v35 = vld [vmem:[%s5261_s1 + $0x3d0] sm:$0xff] }
  0x74   :  { %2523 = vmatpush1.bf16.msra.mxu0 %v2522_v36  ;;  %v2530_v36 = vpack.c.bf16 %v588_v37, %v586_v38  ;;  %v599_v38 = vld [vmem:[%s5261_s1 + $0x408] sm:$0xff]  ;;  %v601_v37 = vld [vmem:[%s5261_s1 + $0x418] sm:$0xff] }
  0x75   :  { %2525 = vmatprep.subr.bf16.mxu0 %v2524_v55  ;;  %v2532_v55 = vpack.c.bf16 %v593_v57, %v591_v34  ;;  %v594_v57 = vld [vmem:[%s5261_s1 + $0x3e0] sm:$0xff]  ;;  %v2536_v34 = vpack.c.bf16 %v597_v39, %v595_v53 }
  0x78   :  { %2527 = vmatpush1.bf16.msra.mxu0 %v2526_v40  ;;  %v2534_v40 = vpack.c.bf16 %v592_v35, %v590_v52 }
  0x79   :  { %2529 = vmatprep.subr.bf16.mxu0 %v2528_v51  ;;  %v596_v51 = vld [vmem:[%s5261_s1 + $0x3f0] sm:$0xff] }
  0x7c   :  { %2531 = vmatpush1.bf16.msra.mxu0 %v2530_v36 }
  0x7d   :  { %2533 = vmatprep.subr.bf16.mxu0 %v2532_v55 }
  0x7e   :  { %345 = vsyncadd [#allocation3], 18432  ;;  %v471_v36 = vld [vmem:[%s5261_s1 + $0x8] sm:$0xff]  ;;  %v473_v52 = vld [vmem:[%s5261_s1 + $0x18] sm:$0xff]  ;;  %v2538_v32 = vpack.c.bf16 %v596_v51, %v594_v57  ;;  %v2540_v48 = vpack.c.bf16 %v601_v37, %v599_v38  ;;  %v376_v57 = vrot.slane %v3938_v50, 1  ;;  %vm427_vm1 = vcmask 1045504  }
  0x7f   :  { %v470_v35 = vld [vmem:[%s5261_s1] sm:$0xff]  ;;  %v472_v55 = vld [vmem:[%s5261_s1 + $0x10] sm:$0xff]  ;;  %v2412_v39 = vpack.c.bf16 %v473_v52, %v471_v36  ;;  %v475_v59 = vld [vmem:[%s5261_s1 + $0x28] sm:$0xff]  ;;  %vm1355_vm6 = vcmask 1040384   ;;  %s2965_s26 = smov 120  }
  0x80   :  { %v598_v53 = vld [vmem:[%s5261_s1 + $0x400] sm:$0xff]  ;;  %v2414_v33 = vpack.c.bf16 %v472_v55, %v470_v35  ;;  %2535 = vmatpush1.bf16.msra.mxu0 %v2534_v40  ;;  %v600_v58 = vld [vmem:[%s5261_s1 + $0x410] sm:$0xff]  ;;  %v477_v49 = vld [vmem:[%s5261_s1 + $0x38] sm:$0xff] }
  0x81   :  { %2537 = vmatprep.subr.bf16.mxu0 %v2536_v34  ;;  %v603_v36 = vld [vmem:[%s5261_s1 + $0x428] sm:$0xff]  ;;  %2413 = vmatprep.subr.bf16.mxu1 %v2412_v39  ;;  %v2416_v40 = vpack.c.bf16 %v477_v49, %v475_v59  ;;  %v474_v51 = vld [vmem:[%s5261_s1 + $0x20] sm:$0xff]  ;;  %v476_v52 = vld [vmem:[%s5261_s1 + $0x30] sm:$0xff] }
  0x82   :  { %v605_v38 = vld [vmem:[%s5261_s1 + $0x438] sm:$0xff]  ;;  %v3985_v49 = vld [vmem:[%s5260_s0 + $0x20] sm:$0xff]  ;;  %2415 = vmatpush1.bf16.msra.mxu1 %v2414_v33  ;;  %v2418_v59 = vpack.c.bf16 %v476_v52, %v474_v51  ;;  %v479_v34 = vld [vmem:[%s5261_s1 + $0x48] sm:$0xff]  ;;  %v2542_v33 = vpack.c.bf16 %v600_v58, %v598_v53  ;;  %v5386_v58 = vrot.slane %v3808_v54, 1 }
  0x83   :  { %v3980_v37 = vld [vmem:[%s5260_s0 + $0x18] sm:$0xff]  ;;  %2417 = vmatprep.subr.bf16.mxu1 %v2416_v40  ;;  %v478_v55 = vld [vmem:[%s5261_s1 + $0x40] sm:$0xff]  ;;  %v480_v52 = vld [vmem:[%s5261_s1 + $0x50] sm:$0xff]  ;;  %v2544_v15 = vpack.c.bf16 %v605_v38, %v603_v36 }
  0x84   :  { %v481_v35 = vld [vmem:[%s5261_s1 + $0x58] sm:$0xff]  ;;  %2539 = vmatpush1.bf16.msra.mxu0 %v2538_v32  ;;  %v3999_v39 = vld [vmem:[%s5260_s0 + $0x60] sm:$0xff]  ;;  %v604_v32 = vld [vmem:[%s5261_s1 + $0x430] sm:$0xff]  ;;  %v377_v53 = vsel %vm372_vm0, %v5386_v58, %v376_v57  ;;  %v2422_v42 = vpack.c.bf16 %v480_v52, %v478_v55 }
  0x85   :  { %v602_v40 = vld [vmem:[%s5261_s1 + $0x420] sm:$0xff]  ;;  %v2420_v51 = vpack.c.bf16 %v481_v35, %v479_v34  ;;  %2541 = vmatprep.subr.bf16.mxu0 %v2540_v48  ;;  %v607_v14 = vld [vmem:[%s5261_s1 + $0x448] sm:$0xff]  ;;  %v378_v34 = vrot.slane %v3980_v37, 1  ;;  %v379_v35 = vrot.slane %v3985_v49, 1  ;;  %v609_v36 = vld [vmem:[%s5261_s1 + $0x458] sm:$0xff] }
  0x86   :  { %v483_v48 = vld [vmem:[%s5261_s1 + $0x68] sm:$0xff]  ;;  %2419 = vmatpush1.bf16.msra.mxu1 %v2418_v59  ;;  %v485_v57 = vld [vmem:[%s5261_s1 + $0x78] sm:$0xff]  ;;  %v482_v43 = vld [vmem:[%s5261_s1 + $0x60] sm:$0xff]  ;;  %v2546_v30 = vpack.c.bf16 %v604_v32, %v602_v40  ;;  %v2548_v52 = vpack.c.bf16 %v609_v36, %v607_v14 }
  0x87   :  { %v4027_v38 = vld [vmem:[%s5260_s0 + $0x28] sm:$0x3]  ;;  %912 = vmatmul.mubr.f32.vlgmr.msra.gmra.mrb[0].mxu0 %v3999_v39  ;;  %2421 = vmatprep.subr.bf16.mxu1 %v2420_v51  ;;  %v2424_v58 = vpack.c.bf16 %v485_v57, %v483_v48  ;;  %v484_v31 = vld [vmem:[%s5261_s1 + $0x70] sm:$0xff]  ;;  %v489_v51 = vld [vmem:[%s5261_s1 + $0x98] sm:$0xff]  ;;  %v380_v32 = vsel %vm372_vm0, %v378_v34, %v379_v35 }
  0x88   :  { %2543 = vmatpush1.bf16.msra.mxu0 %v2542_v33  ;;  %917 = vmatprep.mubr.f32.mxu0 %v377_v53  ;;  %v4042_v59 = vld [vmem:[%s5260_s0 + $0x68] sm:$0xff]  ;;  %v606_v33 = vld [vmem:[%s5261_s1 + $0x440] sm:$0xff]  ;;  %v608_v40 = vld [vmem:[%s5261_s1 + $0x450] sm:$0xff]  ;;  %v381_v53 = vrot.slane %v4027_v38, 1 }
  0x89   :  { %v487_v55 = vld [vmem:[%s5261_s1 + $0x88] sm:$0xff]  ;;  %2545 = vmatprep.subr.bf16.mxu0 %v2544_v15  ;;  %v613_v14 = vld [vmem:[%s5261_s1 + $0x478] sm:$0xff]  ;;  %v2426_v15 = vpack.c.bf16 %v484_v31, %v482_v43  ;;  %v486_v34 = vld [vmem:[%s5261_s1 + $0x80] sm:$0xff]  ;;  %v2550_v13 = vpack.c.bf16 %v608_v40, %v606_v33  ;;  %v457_v12 = vrot.slane %v4042_v59, 2 }
  0x8a   :  { %v611_v48 = vld [vmem:[%s5261_s1 + $0x468] sm:$0xff]  ;;  %2423 = vmatpush1.bf16.msra.mxu1 %v2422_v42  ;;  %v2428_v36 = vpack.c.bf16 %v489_v51, %v487_v55  ;;  %v488_v57 = vld [vmem:[%s5261_s1 + $0x90] sm:$0xff]  ;;  %v4074_v42 = vld [vmem:[%s5260_s0 + $0x78] sm:$0xff]  ;;  %v382_v40 = vsel %vm372_vm0, %v379_v35, %v381_v53 }
  0x8b   :  { %918 = vmatmul.mubr.f32.gmra.mrb[2].mxu0 %v4042_v59  ;;  %2425 = vmatprep.subr.bf16.mxu1 %v2424_v58  ;;  %v491_v31 = vld [vmem:[%s5261_s1 + $0xa8] sm:$0xff]  ;;  %v493_v43 = vld [vmem:[%s5261_s1 + $0xb8] sm:$0xff]  ;;  %v413_v58 = vrot.slane %v3999_v39, 1  ;;  %v2552_v55 = vpack.c.bf16 %v613_v14, %v611_v48  ;;  %v612_v51 = vld [vmem:[%s5261_s1 + $0x470] sm:$0xff]  ;;  %v2430_v48 = vpack.c.bf16 %v488_v57, %v486_v34 }
  0x8c   :  { %2547 = vmatpush1.bf16.msra.mxu0 %v2546_v30  ;;  %923 = vmatprep.mubr.f32.mxu0 %v380_v32  ;;  %v610_v30 = vld [vmem:[%s5261_s1 + $0x460] sm:$0xff]  ;;  %v615_v32 = vld [vmem:[%s5261_s1 + $0x488] sm:$0xff]  ;;  %v2432_v14 = vpack.c.bf16 %v493_v43, %v491_v31  ;;  %v492_v35 = vld [vmem:[%s5261_s1 + $0xb0] sm:$0xff]  ;;  %v5387_v43 = vrot.slane %v4042_v59, 1 }
  0x8d   :  { %2549 = vmatprep.subr.bf16.mxu0 %v2548_v52  ;;  %v617_v52 = vld [vmem:[%s5261_s1 + $0x498] sm:$0xff]  ;;  %v490_v33 = vld [vmem:[%s5261_s1 + $0xa0] sm:$0xff]  ;;  %v2554_v53 = vpack.c.bf16 %v612_v51, %v610_v30  ;;  %v616_v31 = vld [vmem:[%s5261_s1 + $0x490] sm:$0xff] }
  0x8e   :  { %2427 = vmatpush1.bf16.msra.mxu1 %v2426_v15  ;;  %v4107_v15 = vld [vmem:[%s5260_s0 + $0x80] sm:$0xff]  ;;  %v497_v34 = vld [vmem:[%s5261_s1 + $0xd8] sm:$0xff]  ;;  %v2556_v57 = vpack.c.bf16 %v617_v52, %v615_v32  ;;  %v415_v30 = vsel %vm372_vm0, %v413_v58, %v5387_v43  ;;  %v619_v51 = vld [vmem:[%s5261_s1 + $0x4a8] sm:$0xff] }
  0x8f   :  { %924 = vmatmul.mubr.f32.gmra.mrb[4].mxu0 %v4074_v42  ;;  %2429 = vmatprep.subr.bf16.mxu1 %v2428_v36  ;;  %v495_v36 = vld [vmem:[%s5261_s1 + $0xc8] sm:$0xff]  ;;  %v494_v52 = vld [vmem:[%s5261_s1 + $0xc0] sm:$0xff]  ;;  %v496_v58 = vld [vmem:[%s5261_s1 + $0xd0] sm:$0xff] }
  0x90   :  { %2551 = vmatpush1.bf16.msra.mxu0 %v2550_v13  ;;  %929 = vmatprep.mubr.f32.mxu0 %v382_v40  ;;  %v614_v13 = vld [vmem:[%s5261_s1 + $0x480] sm:$0xff]  ;;  %v2434_v40 = vpack.c.bf16 %v492_v35, %v490_v33  ;;  %v2436_v32 = vpack.c.bf16 %v497_v34, %v495_v36  ;;  %v501_v33 = vld [vmem:[%s5261_s1 + $0xf8] sm:$0xff]  ;;  %v623_v36 = vld [vmem:[%s5261_s1 + $0x4c8] sm:$0xff] }
  0x91   :  { %2553 = vmatprep.subr.bf16.mxu0 %v2552_v55  ;;  %v621_v55 = vld [vmem:[%s5261_s1 + $0x4b8] sm:$0xff]  ;;  %v2558_v43 = vpack.c.bf16 %v616_v31, %v614_v13  ;;  %v618_v35 = vld [vmem:[%s5261_s1 + $0x4a0] sm:$0xff]  ;;  %v2438_v13 = vpack.c.bf16 %v496_v58, %v494_v52  ;;  %v624_v58 = vld [vmem:[%s5261_s1 + $0x4d0] sm:$0xff] }
  0x92   :  { %2431 = vmatpush1.bf16.msra.mxu1 %v2430_v48  ;;  %v499_v48 = vld [vmem:[%s5261_s1 + $0xe8] sm:$0xff]  ;;  %v625_v34 = vld [vmem:[%s5261_s1 + $0x4d8] sm:$0xff]  ;;  %v498_v31 = vld [vmem:[%s5261_s1 + $0xe0] sm:$0xff] }
  0x93   :  { %930 = vmatmul.mubr.f32.gmra.mrb[6].mxu0 %v4107_v15  ;;  %2433 = vmatprep.subr.bf16.mxu1 %v2432_v14  ;;  %v2560_v14 = vpack.c.bf16 %v621_v55, %v619_v51  ;;  %v503_v55 = vld [vmem:[%s5261_s1 + $0x108] sm:$0xff]  ;;  %v622_v52 = vld [vmem:[%s5261_s1 + $0x4c0] sm:$0xff]  ;;  %v645_v60 = vld [vmem:[%s5261_s1 + $0x578] sm:$0xff] }
  0x94   :  { %2555 = vmatpush1.bf16.msra.mxu0 %v2554_v53  ;;  %1000 = vmatprep.mubr.f32.mxu0 %v415_v30  ;;  %v620_v53 = vld [vmem:[%s5261_s1 + $0x4b0] sm:$0xff]  ;;  %v4472_v10 = vld [vmem:[%s5260_s0 + $0x48] sm:$0xff]  ;;  %vm4971_vm9 = vmneg %vm1355_vm6 }
  0x95   :  { %2557 = vmatprep.subr.bf16.mxu0 %v2556_v57  ;;  %v2440_v57 = vpack.c.bf16 %v501_v33, %v499_v48  ;;  %v500_v30 = vld [vmem:[%s5261_s1 + $0xf0] sm:$0xff]  ;;  %v2562_v51 = vpack.c.bf16 %v620_v53, %v618_v35  ;;  %v629_v48 = vld [vmem:[%s5261_s1 + $0x4f8] sm:$0xff]  ;;  %v502_v35 = vld [vmem:[%s5261_s1 + $0x100] sm:$0xff] }
  0x96   :  { %2435 = vmatpush1.bf16.msra.mxu1 %v2434_v40  ;;  %v505_v40 = vld [vmem:[%s5261_s1 + $0x118] sm:$0xff]  ;;  %v2442_v33 = vpack.c.bf16 %v500_v30, %v498_v31  ;;  %v504_v53 = vld [vmem:[%s5261_s1 + $0x110] sm:$0xff]  ;;  %v626_v31 = vld [vmem:[%s5261_s1 + $0x4e0] sm:$0xff] }
  0x97   :  { %2437 = vmatprep.subr.bf16.mxu1 %v2436_v32  ;;  %v2564_v32 = vpack.c.bf16 %v625_v34, %v623_v36  ;;  %v2566_v36 = vpack.c.bf16 %v624_v58, %v622_v52  ;;  %v507_v34 = vld [vmem:[%s5261_s1 + $0x128] sm:$0xff]  ;;  %v628_v30 = vld [vmem:[%s5261_s1 + $0x4f0] sm:$0xff]  ;;  %v506_v52 = vld [vmem:[%s5261_s1 + $0x120] sm:$0xff] }
  0x98   :  { %2559 = vmatpush1.bf16.msra.mxu0 %v2558_v43  ;;  %v627_v43 = vld [vmem:[%s5261_s1 + $0x4e8] sm:$0xff]  ;;  %v508_v58 = vld [vmem:[%s5261_s1 + $0x130] sm:$0xff] }
  0x99   :  { %2561 = vmatprep.subr.bf16.mxu0 %v2560_v14  ;;  %v2444_v14 = vpack.c.bf16 %v505_v40, %v503_v55  ;;  %v633_v55 = vld [vmem:[%s5261_s1 + $0x518] sm:$0xff]  ;;  %v2446_v40 = vpack.c.bf16 %v504_v53, %v502_v35  ;;  %v630_v53 = vld [vmem:[%s5261_s1 + $0x500] sm:$0xff]  ;;  %v520_v29 = vld [vmem:[%s5261_s1 + $0x190] sm:$0xff] }
  0x9a   :  { %2439 = vmatpush1.bf16.msra.mxu1 %v2438_v13  ;;  %v509_v13 = vld [vmem:[%s5261_s1 + $0x138] sm:$0xff] }
  0x9b   :  { %2441 = vmatprep.subr.bf16.mxu1 %v2440_v57  ;;  %v2568_v57 = vpack.c.bf16 %v629_v48, %v627_v43  ;;  %v456_v43 = vrot.slane %v3999_v39, 2  ;;  %v2570_v48 = vpack.c.bf16 %v628_v30, %v626_v31  ;;  %v632_v39 = vld [vmem:[%s5261_s1 + $0x510] sm:$0xff]  ;;  %v510_v31 = vld [vmem:[%s5261_s1 + $0x140] sm:$0xff] }
  0x9c   :  { %2563 = vmatpush1.bf16.msra.mxu0 %v2562_v51  ;;  %v631_v51 = vld [vmem:[%s5261_s1 + $0x508] sm:$0xff]  ;;  %v512_v30 = vld [vmem:[%s5261_s1 + $0x150] sm:$0xff] }
  0x9d   :  { %2565 = vmatprep.subr.bf16.mxu0 %v2564_v32  ;;  %v2448_v32 = vpack.c.bf16 %v509_v13, %v507_v34  ;;  %v2572_v35 = vpack.c.bf16 %v633_v55, %v631_v51  ;;  %v637_v34 = vld [vmem:[%s5261_s1 + $0x538] sm:$0xff]  ;;  %v2450_v13 = vpack.c.bf16 %v508_v58, %v506_v52  ;;  %v2574_v51 = vpack.c.bf16 %v632_v39, %v630_v53  ;;  %v515_v55 = vld [vmem:[%s5261_s1 + $0x168] sm:$0xff]  ;;  %v634_v58 = vld [vmem:[%s5261_s1 + $0x520] sm:$0xff] }
  0x9e   :  { %2443 = vmatpush1.bf16.msra.mxu1 %v2442_v33  ;;  %v511_v33 = vld [vmem:[%s5261_s1 + $0x148] sm:$0xff]  ;;  %v514_v39 = vld [vmem:[%s5261_s1 + $0x160] sm:$0xff] }
  0x9f   :  { %2445 = vmatprep.subr.bf16.mxu1 %v2444_v14  ;;  %v513_v14 = vld [vmem:[%s5261_s1 + $0x158] sm:$0xff] }
  0xa0   :  { %2567 = vmatpush1.bf16.msra.mxu0 %v2566_v36  ;;  %v635_v36 = vld [vmem:[%s5261_s1 + $0x528] sm:$0xff] }
  0xa1   :  { %2569 = vmatprep.subr.bf16.mxu0 %v2568_v57  ;;  %v2452_v57 = vpack.c.bf16 %v513_v14, %v511_v33  ;;  %v2576_v52 = vpack.c.bf16 %v637_v34, %v635_v36  ;;  %v639_v33 = vld [vmem:[%s5261_s1 + $0x548] sm:$0xff]  ;;  %v641_v14 = vld [vmem:[%s5261_s1 + $0x558] sm:$0xff]  ;;  %v516_v36 = vld [vmem:[%s5261_s1 + $0x170] sm:$0xff] }
  0xa2   :  { %2447 = vmatpush1.bf16.msra.mxu1 %v2446_v40  ;;  %v517_v40 = vld [vmem:[%s5261_s1 + $0x178] sm:$0xff]  ;;  %v2458_v61 = vpack.c.bf16 %v516_v36, %v514_v39  ;;  %v642_v36 = vld [vmem:[%s5261_s1 + $0x560] sm:$0xff] }
  0xa3   :  { %2449 = vmatprep.subr.bf16.mxu1 %v2448_v32  ;;  %v4242_v32 = vsel %vm427_vm1, %v456_v43, %v457_v12  ;;  %v2454_v43 = vpack.c.bf16 %v512_v30, %v510_v31  ;;  %v2456_v53 = vpack.c.bf16 %v517_v40, %v515_v55  ;;  %v462_v31 = vrot.slane %v4107_v15, 2  ;;  %v519_v30 = vld [vmem:[%s5261_s1 + $0x188] sm:$0xff] }
  0xa4   :  { %2571 = vmatpush1.bf16.msra.mxu0 %v2570_v48  ;;  %v636_v48 = vld [vmem:[%s5261_s1 + $0x530] sm:$0xff]  ;;  %v2580_v40 = vpack.c.bf16 %v641_v14, %v639_v33  ;;  %v518_v14 = vld [vmem:[%s5261_s1 + $0x180] sm:$0xff] }
  0xa5   :  { %2573 = vmatprep.subr.bf16.mxu0 %v2572_v35  ;;  %v4259_v35 = vld [vmem:[%s5260_s0 + $0x70] sm:$0x3]  ;;  %v2578_v34 = vpack.c.bf16 %v636_v48, %v634_v58  ;;  %v643_v48 = vld [vmem:[%s5261_s1 + $0x568] sm:$0xff] }
  0xa6   :  { %2451 = vmatpush1.bf16.msra.mxu1 %v2450_v13  ;;  %v461_v13 = vrot.slane %v4074_v42, 2  ;;  %v459_v55 = vrot.slane %v4259_v35, 2  ;;  %v640_v58 = vld [vmem:[%s5261_s1 + $0x550] sm:$0xff]  ;;  %v2584_v39 = vpack.c.bf16 %v645_v60, %v643_v48  ;;  %v4321_v60 = vld [vmem:[%s5260_s0 + $0x88] sm:$0x3] }
  0xa7   :  { %2453 = vmatprep.subr.bf16.mxu1 %v2452_v57  ;;  %v521_v57 = vld [vmem:[%s5261_s1 + $0x198] sm:$0xff]  ;;  %v464_v48 = vrot.slane %v4321_v60, 2 }
  0xa8   :  { %2575 = vmatpush1.bf16.msra.mxu0 %v2574_v51  ;;  %v638_v51 = vld [vmem:[%s5261_s1 + $0x540] sm:$0xff]  ;;  %v2460_v33 = vpack.c.bf16 %v521_v57, %v519_v30  ;;  %v647_v30 = vld [vmem:[%s5261_s1 + $0x588] sm:$0xff]  ;;  %v649_v57 = vld [vmem:[%s5261_s1 + $0x598] sm:$0xff] }
  0xa9   :  { %2577 = vmatprep.subr.bf16.mxu0 %v2576_v52  ;;  %v4289_v52 = vsel %vm427_vm1, %v457_v12, %v459_v55  ;;  %v2582_v28 = vpack.c.bf16 %v640_v58, %v638_v51  ;;  %v525_v12 = vld [vmem:[%s5261_s1 + $0x1b8] sm:$0xff]  ;;  %v524_v51 = vld [vmem:[%s5261_s1 + $0x1b0] sm:$0xff] }
  0xaa   :  { %2455 = vmatpush1.bf16.msra.mxu1 %v2454_v43  ;;  %v523_v43 = vld [vmem:[%s5261_s1 + $0x1a8] sm:$0xff] }
  0xab   :  { %2457 = vmatprep.subr.bf16.mxu1 %v2456_v53  ;;  %v4304_v53 = vsel %vm427_vm1, %v461_v13, %v462_v31  ;;  %v2462_v13 = vpack.c.bf16 %v520_v29, %v518_v14  ;;  %v2464_v55 = vpack.c.bf16 %v525_v12, %v523_v43  ;;  %v527_v29 = vld [vmem:[%s5261_s1 + $0x1c8] sm:$0xff]  ;;  %v646_v14 = vld [vmem:[%s5261_s1 + $0x580] sm:$0xff]  ;;  %v653_v12 = vld [vmem:[%s5261_s1 + $0x5b8] sm:$0xff] }
  0xac   :  { %2579 = vmatpush1.bf16.msra.mxu0 %v2578_v34  ;;  %v644_v34 = vld [vmem:[%s5261_s1 + $0x570] sm:$0xff]  ;;  %v651_v43 = vld [vmem:[%s5261_s1 + $0x5a8] sm:$0xff] }
  0xad   :  { %2581 = vmatprep.subr.bf16.mxu0 %v2580_v40  ;;  %v522_v40 = vld [vmem:[%s5261_s1 + $0x1a0] sm:$0xff]  ;;  %v2586_v58 = vpack.c.bf16 %v644_v34, %v642_v36 }
  0xae   :  { %2459 = vmatpush1.bf16.msra.mxu1 %v2458_v61  ;;  %v529_v61 = vld [vmem:[%s5261_s1 + $0x1d8] sm:$0xff]  ;;  %v2466_v36 = vpack.c.bf16 %v524_v51, %v522_v40  ;;  %v650_v40 = vld [vmem:[%s5261_s1 + $0x5a0] sm:$0xff]  ;;  %v652_v51 = vld [vmem:[%s5261_s1 + $0x5b0] sm:$0xff] }
  0xaf   :  { %2461 = vmatprep.subr.bf16.mxu1 %v2460_v33  ;;  %v2588_v33 = vpack.c.bf16 %v649_v57, %v647_v30  ;;  %v2468_v34 = vpack.c.bf16 %v529_v61, %v527_v29  ;;  %v526_v30 = vld [vmem:[%s5261_s1 + $0x1c0] sm:$0xff]  ;;  %v528_v57 = vld [vmem:[%s5261_s1 + $0x1d0] sm:$0xff]  ;;  %v657_v29 = vld [vmem:[%s5261_s1 + $0x5d8] sm:$0xff] }
  0xb0   :  { %2583 = vmatpush1.bf16.msra.mxu0 %v2582_v28  ;;  %v648_v28 = vld [vmem:[%s5261_s1 + $0x590] sm:$0xff]  ;;  %v2470_v61 = vpack.c.bf16 %v528_v57, %v526_v30  ;;  %v661_v57 = vld [vmem:[%s5261_s1 + $0x5f8] sm:$0xff] }
  0xb1   :  { %2585 = vmatprep.subr.bf16.mxu0 %v2584_v39  ;;  %v4349_v39 = vsel %vm427_vm1, %v462_v31, %v464_v48  ;;  %v2590_v11 = vpack.c.bf16 %v648_v28, %v646_v14  ;;  %v533_v31 = vld [vmem:[%s5261_s1 + $0x1f8] sm:$0xff]  ;;  %v532_v14 = vld [vmem:[%s5261_s1 + $0x1f0] sm:$0xff]  ;;  %v2594_v28 = vpack.c.bf16 %v652_v51, %v650_v40 }
  0xb2   :  { %2463 = vmatpush1.bf16.msra.mxu1 %v2462_v13  ;;  %v531_v13 = vld [vmem:[%s5261_s1 + $0x1e8] sm:$0xff]  ;;  %v656_v30 = vld [vmem:[%s5261_s1 + $0x5d0] sm:$0xff]  ;;  %v1218_v51 = vld [vmem:[%s5262_s2 + $0x18] sm:$0xff] }
  0xb3   :  { %2465 = vmatprep.subr.bf16.mxu1 %v2464_v55  ;;  %v2592_v55 = vpack.c.bf16 %v653_v12, %v651_v43  ;;  %v2472_v48 = vpack.c.bf16 %v533_v31, %v531_v13  ;;  %v1215_v43 = vld [vmem:[%s5262_s2] sm:$0xff]  ;;  %v1216_v12 = vld [vmem:[%s5262_s2 + $0x8] sm:$0xff]  ;;  %v1217_v40 = vld [vmem:[%s5262_s2 + $0x10] sm:$0xff] }
  0xb4   :  { %2587 = vmatpush1.bf16.msra.mxu0 %v2586_v58  ;;  %v655_v58 = vld [vmem:[%s5261_s1 + $0x5c8] sm:$0xff]  ;;  %v2700_v31 = vpack.c.bf16 %v1216_v12, %v1215_v43  ;;  %v393_v12 = vrot.slane %v3896_v41, 1 }
  0xb5   :  { %2589 = vmatprep.subr.bf16.mxu0 %v2588_v33  ;;  %v530_v33 = vld [vmem:[%s5261_s1 + $0x1e0] sm:$0xff] }
  0xb6   :  { %2467 = vmatpush1.bf16.msra.mxu1 %v2466_v36  ;;  %v2596_v36 = vpack.c.bf16 %v657_v29, %v655_v58  ;;  %v2474_v13 = vpack.c.bf16 %v532_v14, %v530_v33  ;;  %v658_v29 = vld [vmem:[%s5261_s1 + $0x5e0] sm:$0xff]  ;;  %v663_v33 = vld [vmem:[%s5261_s1 + $0x608] sm:$0xff]  ;;  %v665_v14 = vld [vmem:[%s5261_s1 + $0x618] sm:$0xff] }
  0xb7   :  { %2469 = vmatprep.subr.bf16.mxu1 %v2468_v34  ;;  %v654_v34 = vld [vmem:[%s5261_s1 + $0x5c0] sm:$0xff] }
  0xb8   :  { %2591 = vmatpush1.bf16.msra.mxu0 %v2590_v11  ;;  %v659_v11 = vld [vmem:[%s5261_s1 + $0x5e8] sm:$0xff] }
  0xb9   :  { %2593 = vmatprep.subr.bf16.mxu0 %v2592_v55  ;;  %v2598_v55 = vpack.c.bf16 %v656_v30, %v654_v34  ;;  %v2600_v58 = vpack.c.bf16 %v661_v57, %v659_v11  ;;  %v1219_v34 = vld [vmem:[%s5262_s2 + $0x20] sm:$0xff]  ;;  %v1220_v30 = vld [vmem:[%s5262_s2 + $0x28] sm:$0xff]  ;;  %v2604_v11 = vpack.c.bf16 %v665_v14, %v663_v33  ;;  %v1221_v14 = vld [vmem:[%s5262_s2 + $0x30] sm:$0xff] }
  0xba   :  { %2471 = vmatpush1.bf16.msra.mxu1 %v2470_v61  ;;  %v660_v61 = vld [vmem:[%s5261_s1 + $0x5f0] sm:$0xff]  ;;  %v662_v57 = vld [vmem:[%s5261_s1 + $0x600] sm:$0xff] }
  0xbb   :  { %2473 = vmatprep.subr.bf16.mxu1 %v2472_v48  ;;  %v4414_v48 = vld [vmem:[%s5260_s0 + $0x38] sm:$0xff]  ;;  %v2602_v43 = vpack.c.bf16 %v660_v61, %v658_v29 }
  0xbc   :  { %2595 = vmatpush1.bf16.msra.mxu0 %v2594_v28  ;;  %v2704_v28 = vpack.c.bf16 %v1218_v51, %v1217_v40  ;;  %v4440_v40 = vld [vmem:[%s5260_s0 + $0x40] sm:$0x3]  ;;  %v667_v51 = vld [vmem:[%s5261_s1 + $0x628] sm:$0xff] }
  0xbd   :  { %2597 = vmatprep.subr.bf16.mxu0 %v2596_v36  ;;  %v394_v36 = vrot.slane %v4414_v48, 1  ;;  %v396_v33 = vrot.slane %v4440_v40, 1 }
  0xbe   :  { %2475 = vmatpush1.bf16.msra.mxu1 %v2474_v13  ;;  %v664_v13 = vld [vmem:[%s5261_s1 + $0x610] sm:$0xff] }
  0xbf   :  { %2701 = vmatprep.subr.bf16.mxu1 %v2700_v31  ;;  %v395_v29 = vsel %vm372_vm0, %v393_v12, %v394_v36  ;;  %v2606_v61 = vpack.c.bf16 %v664_v13, %v662_v57  ;;  %v5388_v57 = vrot.slane %v4042_v59, 1  ;;  %v673_v59 = vld [vmem:[%s5261_s1 + $0x658] sm:$0xff] }
  0xc0   :  { %2599 = vmatpush1.bf16.msra.mxu0 %v2598_v55  ;;  %v416_v55 = vrot.slane %v4259_v35, 1  ;;  %v2708_v35 = vpack.c.bf16 %v1220_v30, %v1219_v34  ;;  %v418_v34 = vrot.slane %v4074_v42, 1  ;;  %v668_v30 = vld [vmem:[%s5261_s1 + $0x630] sm:$0xff] }
  0xc1   :  { %2601 = vmatprep.subr.bf16.mxu0 %v2600_v58  ;;  %823 = vmatmul.mubr.f32.vlgmr.msra.gmra.mrb[0].mxu1 %v3803_v56  ;;  %v669_v58 = vld [vmem:[%s5261_s1 + $0x638] sm:$0xff]  ;;  %v666_v56 = vld [vmem:[%s5261_s1 + $0x620] sm:$0xff]  ;;  %v4477_v42 = vld [vmem:[%s5260_s0 + $0x50] sm:$0xff] }
  0xc2   :  { %828 = vmatprep.mubr.f32.mxu1 %v4414_v48  ;;  %2703 = vmatpush3.bf16.msra.mxu1 %v2700_v31  ;;  %v1222_v31 = vld [vmem:[%s5262_s2 + $0x38] sm:$0xff]  ;;  %v2608_v12 = vpack.c.bf16 %v669_v58, %v667_v51  ;;  %v417_v13 = vsel %vm372_vm0, %v5388_v57, %v416_v55  ;;  %v2610_v55 = vpack.c.bf16 %v668_v30, %v666_v56  ;;  %v399_v58 = vrot.slane %v4477_v42, 1  ;;  %v1223_v57 = vld [vmem:[%s5262_s2 + $0x40] sm:$0xff] }
  0xc3   :  { %2705 = vmatprep.subr.bf16.mxu1 %v2704_v28  ;;  %v397_v51 = vsel %vm372_vm0, %v394_v36, %v396_v33  ;;  %v672_v36 = vld [vmem:[%s5261_s1 + $0x650] sm:$0xff]  ;;  %v421_v33 = vrot.slane %v4321_v60, 1 }
  0xc4   :  { %2603 = vmatpush1.bf16.msra.mxu0 %v2602_v43  ;;  %v419_v43 = vrot.slane %v4107_v15, 1  ;;  %v671_v15 = vld [vmem:[%s5261_s1 + $0x648] sm:$0xff] }
  0xc5   :  { %2605 = vmatprep.subr.bf16.mxu0 %v2604_v11  ;;  %829 = vmatmul.mubr.f32.gmra.mrb[2].mxu1 %v3808_v54  ;;  %v2712_v11 = vpack.c.bf16 %v1222_v31, %v1221_v14  ;;  %v398_v54 = vrot.slane %v4472_v10, 1  ;;  %v4507_v14 = vld [vmem:[%s5260_s0 + $0x58] sm:$0x3]  ;;  %v675_v31 = vld [vmem:[%s5261_s1 + $0x668] sm:$0xff] }
  0xc6   :  { %834 = vmatprep.mubr.f32.mxu1 %v4472_v10  ;;  %2707 = vmatpush3.bf16.msra.mxu1 %v2704_v28  ;;  %v1224_v28 = vld [vmem:[%s5262_s2 + $0x48] sm:$0xff]  ;;  %v420_v56 = vsel %vm372_vm0, %v418_v34, %v419_v43 }
  0xc7   :  { %1001 = vmatmul.mubr.f32.vlgmr.msra.gmra.mrb[0].mxu0 %v395_v29  ;;  %2709 = vmatprep.subr.bf16.mxu1 %v2708_v35  ;;  %v2612_v29 = vpack.c.bf16 %v673_v59, %v671_v15  ;;  %v2716_v60 = vpack.c.bf16 %v1224_v28, %v1223_v57  ;;  %v400_v30 = vsel %vm372_vm0, %v398_v54, %v399_v58  ;;  %v1225_v15 = vld [vmem:[%s5262_s2 + $0x50] sm:$0xff]  ;;  %v1226_v59 = vld [vmem:[%s5262_s2 + $0x58] sm:$0xff]  ;;  %v442_v57 = vrot.slane %v3896_v41, 2 }
  0xc8   :  { %2607 = vmatpush1.bf16.msra.mxu0 %v2606_v61  ;;  %1006 = vmatprep.mubr.f32.mxu0 %v417_v13  ;;  %v670_v61 = vld [vmem:[%s5261_s1 + $0x640] sm:$0xff]  ;;  %v401_v13 = vrot.slane %v4507_v14, 1  ;;  %v422_v54 = vsel %vm372_vm0, %v419_v43, %v421_v33  ;;  %v443_v28 = vrot.slane %v4414_v48, 2 }
  0xc9   :  { %2609 = vmatprep.subr.bf16.mxu0 %v2608_v12  ;;  %835 = vmatmul.mubr.f32.gmra.mrb[4].mxu1 %v3980_v37  ;;  %v677_v12 = vld [vmem:[%s5261_s1 + $0x678] sm:$0xff]  ;;  %v2614_v34 = vpack.c.bf16 %v672_v36, %v670_v61  ;;  %v2720_v36 = vpack.c.bf16 %v1226_v59, %v1225_v15  ;;  %v678_v33 = vld [vmem:[%s5261_s1 + $0x680] sm:$0xff]  ;;  %v684_v15 = vld [vmem:[%s5261_s1 + $0x6b0] sm:$0xff] }
  0xca   :  { %840 = vmatprep.mubr.f32.mxu1 %v4477_v42  ;;  %2711 = vmatpush3.bf16.msra.mxu1 %v2708_v35  ;;  %v2616_v35 = vpack.c.bf16 %v677_v12, %v675_v31  ;;  %v681_v61 = vld [vmem:[%s5261_s1 + $0x698] sm:$0xff]  ;;  %v402_v41 = vsel %vm372_vm0, %v399_v58, %v401_v13  ;;  %v680_v31 = vld [vmem:[%s5261_s1 + $0x690] sm:$0xff]  ;;  %v683_v12 = vld [vmem:[%s5261_s1 + $0x6a8] sm:$0xff] }
  0xcb   :  { %1007 = vmatmul.mubr.f32.gmra.mrb[2].mxu0 %v397_v51  ;;  %2713 = vmatprep.subr.bf16.mxu1 %v2712_v11  ;;  %v676_v51 = vld [vmem:[%s5261_s1 + $0x670] sm:$0xff]  ;;  %v685_v58 = vld [vmem:[%s5261_s1 + $0x6b8] sm:$0xff]  ;;  %v682_v13 = vld [vmem:[%s5261_s1 + $0x6a0] sm:$0xff] }
  0xcc   :  { %2611 = vmatpush1.bf16.msra.mxu0 %v2610_v55  ;;  %1012 = vmatprep.mubr.f32.mxu0 %v420_v56  ;;  %v674_v55 = vld [vmem:[%s5261_s1 + $0x660] sm:$0xff]  ;;  %v687_v59 = vld [vmem:[%s5261_s1 + $0x6c8] sm:$0xff] }
  0xcd   :  { %2613 = vmatprep.subr.bf16.mxu0 %v2612_v29  ;;  %841 = vmatmul.mubr.f32.gmra.mrb[6].mxu1 %v3985_v49  ;;  %v679_v29 = vld [vmem:[%s5261_s1 + $0x688] sm:$0xff]  ;;  %v2618_v43 = vpack.c.bf16 %v676_v51, %v674_v55  ;;  %v686_v51 = vld [vmem:[%s5261_s1 + $0x6c0] sm:$0xff] }
  0xce   :  { %2715 = vmatpush3.bf16.msra.mxu1 %v2712_v11  ;;  %v2620_v56 = vpack.c.bf16 %v681_v61, %v679_v29  ;;  %v444_v11 = vsel %vm427_vm1, %v442_v57, %v443_v28  ;;  %v691_v57 = vld [vmem:[%s5261_s1 + $0x6e8] sm:$0xff]  ;;  %v693_v29 = vld [vmem:[%s5261_s1 + $0x6f8] sm:$0xff] }
  0xcf   :  { %1013 = vmatmul.mubr.f32.gmra.mrb[4].mxu0 %v400_v30  ;;  %2717 = vmatprep.subr.bf16.mxu1 %v2716_v60  ;;  %v2624_v30 = vpack.c.bf16 %v685_v58, %v683_v12  ;;  %v694_v12 = vld [vmem:[%s5261_s1 + $0x700] sm:$0xff]  ;;  %v696_v58 = vld [vmem:[%s5261_s1 + $0x710] sm:$0xff] }
  0xd0   :  { %2615 = vmatpush1.bf16.msra.mxu0 %v2614_v34  ;;  %1018 = vmatprep.mubr.f32.mxu0 %v422_v54  ;;  %v2622_v34 = vpack.c.bf16 %v680_v31, %v678_v33  ;;  %v688_v54 = vld [vmem:[%s5261_s1 + $0x6d0] sm:$0xff]  ;;  %v697_v33 = vld [vmem:[%s5261_s1 + $0x718] sm:$0xff] }
  0xd1   :  { %2617 = vmatprep.subr.bf16.mxu0 %v2616_v35  ;;  %v2626_v35 = vpack.c.bf16 %v684_v15, %v682_v13  ;;  %v2630_v61 = vpack.c.bf16 %v688_v54, %v686_v51  ;;  %v2638_v13 = vpack.c.bf16 %v696_v58, %v694_v12 }
  0xd2   :  { %2719 = vmatpush3.bf16.msra.mxu1 %v2716_v60  ;;  %v689_v60 = vld [vmem:[%s5261_s1 + $0x6d8] sm:$0xff] }
  0xd3   :  { %1019 = vmatmul.mubr.f32.gmra.mrb[6].mxu0 %v402_v41  ;;  %2721 = vmatprep.subr.bf16.mxu1 %v2720_v36  ;;  %v2628_v55 = vpack.c.bf16 %v689_v60, %v687_v59  ;;  %v692_v41 = vld [vmem:[%s5261_s1 + $0x6f0] sm:$0xff]  ;;  %v698_v59 = vld [vmem:[%s5261_s1 + $0x720] sm:$0xff] }
  0xd4   :  { %2619 = vmatpush1.bf16.msra.mxu0 %v2618_v43  ;;  %1089 = vmatprep.mubr.f32.mxu0 %v444_v11  ;;  %v690_v43 = vld [vmem:[%s5261_s1 + $0x6e0] sm:$0xff]  ;;  %v700_v60 = vld [vmem:[%s5261_s1 + $0x730] sm:$0xff] }
  0xd5   :  { %2621 = vmatprep.subr.bf16.mxu0 %v2620_v56  ;;  %v695_v56 = vld [vmem:[%s5261_s1 + $0x708] sm:$0xff]  ;;  %v2634_v31 = vpack.c.bf16 %v692_v41, %v690_v43  ;;  %v2642_v51 = vpack.c.bf16 %v700_v60, %v698_v59 }
  0xd6   :  { %2723 = vmatpush3.bf16.msra.mxu1 %v2720_v36  ;;  %v2632_v36 = vpack.c.bf16 %v693_v29, %v691_v57  ;;  %v2636_v11 = vpack.c.bf16 %v697_v33, %v695_v56  ;;  %v702_v57 = vld [vmem:[%s5261_s1 + $0x740] sm:$0xff]  ;;  %v704_v29 = vld [vmem:[%s5261_s1 + $0x750] sm:$0xff] }
  0xd7   :  { %v2646_v43 = vpack.c.bf16 %v704_v29, %v702_v57  ;;  %v706_v56 = vld [vmem:[%s5261_s1 + $0x760] sm:$0xff]  ;;  %v708_v33 = vld [vmem:[%s5261_s1 + $0x770] sm:$0xff] }
  0xd8   :  { %2623 = vmatpush1.bf16.msra.mxu0 %v2622_v34  ;;  %v699_v34 = vld [vmem:[%s5261_s1 + $0x728] sm:$0xff]  ;;  %v2650_v12 = vpack.c.bf16 %v708_v33, %v706_v56 }
  0xd9   :  { %2625 = vmatprep.subr.bf16.mxu0 %v2624_v30  ;;  %v701_v30 = vld [vmem:[%s5261_s1 + $0x738] sm:$0xff] }
  0xda   :  { %v2640_v15 = vpack.c.bf16 %v701_v30, %v699_v34  ;;  %v710_v34 = vld [vmem:[%s5261_s1 + $0x780] sm:$0xff]  ;;  %v712_v30 = vld [vmem:[%s5261_s1 + $0x790] sm:$0xff] }
  0xdb   :  { %v2654_v59 = vpack.c.bf16 %v712_v30, %v710_v34  ;;  %v2959_v34 = vld [vmem:[%s5260_s0] sm:$0xff] }
  0xdc   :  { %2627 = vmatpush1.bf16.msra.mxu0 %v2626_v35  ;;  %v703_v35 = vld [vmem:[%s5261_s1 + $0x748] sm:$0xff]  ;;  %v428_v30 = vrot.slane %v2959_v34, 2  ;;  %v736_v34 = vld [vmem:[%s5261_s1 + $0x850] sm:$0xff] }
  0xdd   :  { %2629 = vmatprep.subr.bf16.mxu0 %v2628_v55  ;;  %v705_v55 = vld [vmem:[%s5261_s1 + $0x758] sm:$0xff] }
  0xde   :  { %v2644_v54 = vpack.c.bf16 %v705_v55, %v703_v35  ;;  %v714_v35 = vld [vmem:[%s5261_s1 + $0x7a0] sm:$0xff]  ;;  %v716_v55 = vld [vmem:[%s5261_s1 + $0x7b0] sm:$0xff] }
  0xdf   :  { %v2658_v57 = vpack.c.bf16 %v716_v55, %v714_v35  ;;  %v726_v35 = vld [vmem:[%s5261_s1 + $0x800] sm:$0xff]  ;;  %v728_v55 = vld [vmem:[%s5261_s1 + $0x810] sm:$0xff] }
  0xe0   :  { %2631 = vmatpush1.bf16.msra.mxu0 %v2630_v61  ;;  %v707_v61 = vld [vmem:[%s5261_s1 + $0x768] sm:$0xff] }
  0xe1   :  { %2633 = vmatprep.subr.bf16.mxu0 %v2632_v36  ;;  %v709_v36 = vld [vmem:[%s5261_s1 + $0x778] sm:$0xff] }
  0xe2   :  { %v2648_v41 = vpack.c.bf16 %v709_v36, %v707_v61  ;;  %v718_v61 = vld [vmem:[%s5261_s1 + $0x7c0] sm:$0xff]  ;;  %v720_v36 = vld [vmem:[%s5261_s1 + $0x7d0] sm:$0xff] }
  0xe3   :  { %v2662_v56 = vpack.c.bf16 %v720_v36, %v718_v61  ;;  %v2670_v61 = vpack.c.bf16 %v728_v55, %v726_v35  ;;  %v431_v36 = vrot.slane %v3938_v50, 2  ;;  %v735_v50 = vld [vmem:[%s5261_s1 + $0x848] sm:$0xff]  ;;  %v740_v55 = vld [vmem:[%s5261_s1 + $0x870] sm:$0xff] }
  0xe4   :  { %2635 = vmatpush1.bf16.msra.mxu0 %v2634_v31  ;;  %v711_v31 = vld [vmem:[%s5261_s1 + $0x788] sm:$0xff] }
  0xe5   :  { %2637 = vmatprep.subr.bf16.mxu0 %v2636_v11  ;;  %v713_v11 = vld [vmem:[%s5261_s1 + $0x798] sm:$0xff] }
  0xe6   :  { %v2652_v58 = vpack.c.bf16 %v713_v11, %v711_v31  ;;  %v722_v31 = vld [vmem:[%s5261_s1 + $0x7e0] sm:$0xff]  ;;  %v724_v11 = vld [vmem:[%s5261_s1 + $0x7f0] sm:$0xff] }
  0xe8   :  { %2639 = vmatpush1.bf16.msra.mxu0 %v2638_v13  ;;  %v715_v13 = vld [vmem:[%s5261_s1 + $0x7a8] sm:$0xff] }
  0xe9   :  { %2641 = vmatprep.subr.bf16.mxu0 %v2640_v15  ;;  %v717_v15 = vld [vmem:[%s5261_s1 + $0x7b8] sm:$0xff] }
  0xea   :  { %v2656_v60 = vpack.c.bf16 %v717_v15, %v715_v13  ;;  %v2960_v13 = vld [vmem:[%s5260_s0 + $0x8] sm:$0xff] }
  0xeb   :  { %v429_v15 = vrot.slane %v2960_v13, 2  ;;  %v450_v13 = vrot.slane %v4507_v14, 2  ;;  %v738_v14 = vld [vmem:[%s5261_s1 + $0x860] sm:$0xff] }
  0xec   :  { %2643 = vmatpush1.bf16.msra.mxu0 %v2642_v51  ;;  %v719_v51 = vld [vmem:[%s5261_s1 + $0x7c8] sm:$0xff] }
  0xed   :  { %2645 = vmatprep.subr.bf16.mxu0 %v2644_v54  ;;  %v721_v54 = vld [vmem:[%s5261_s1 + $0x7d8] sm:$0xff]  ;;  %v432_v48 = vsel %vm427_vm1, %v429_v15, %v431_v36  ;;  %v742_v36 = vld [vmem:[%s5261_s1 + $0x880] sm:$0xff] }
  0xee   :  { %v2660_v29 = vpack.c.bf16 %v721_v54, %v719_v51  ;;  %v445_v51 = vrot.slane %v4440_v40, 2  ;;  %v731_v54 = vld [vmem:[%s5261_s1 + $0x828] sm:$0xff]  ;;  %v730_v40 = vld [vmem:[%s5261_s1 + $0x820] sm:$0xff] }
  0xf0   :  { %2647 = vmatpush1.bf16.msra.mxu0 %v2646_v43  ;;  %v723_v43 = vld [vmem:[%s5261_s1 + $0x7e8] sm:$0xff] }
  0xf1   :  { %2649 = vmatprep.subr.bf16.mxu0 %v2648_v41  ;;  %v725_v41 = vld [vmem:[%s5261_s1 + $0x7f8] sm:$0xff] }
  0xf2   :  { %v2664_v33 = vpack.c.bf16 %v725_v41, %v723_v43  ;;  %v732_v41 = vld [vmem:[%s5261_s1 + $0x830] sm:$0xff] }
  0xf4   :  { %2651 = vmatpush1.bf16.msra.mxu0 %v2650_v12  ;;  %v727_v12 = vld [vmem:[%s5261_s1 + $0x808] sm:$0xff] }
  0xf5   :  { %2653 = vmatprep.subr.bf16.mxu0 %v2652_v58  ;;  %v729_v58 = vld [vmem:[%s5261_s1 + $0x818] sm:$0xff] }
  0xf8   :  { %2655 = vmatpush1.bf16.msra.mxu0 %v2654_v59  ;;  %v2666_v59 = vpack.c.bf16 %v724_v11, %v722_v31  ;;  %v448_v31 = vrot.slane %v4477_v42, 2  ;;  %v737_v11 = vld [vmem:[%s5261_s1 + $0x858] sm:$0xff] }
  0xf9   :  { %2657 = vmatprep.subr.bf16.mxu0 %v2656_v60  ;;  %v2668_v60 = vpack.c.bf16 %v729_v58, %v727_v12  ;;  %v2674_v12 = vpack.c.bf16 %v732_v41, %v730_v40  ;;  %v2676_v42 = vpack.c.bf16 %v737_v11, %v735_v50  ;;  %v734_v58 = vld [vmem:[%s5261_s1 + $0x840] sm:$0xff]  ;;  %v747_v40 = vld [vmem:[%s5261_s1 + $0x8a8] sm:$0xff]  ;;  %v749_v41 = vld [vmem:[%s5261_s1 + $0x8b8] sm:$0xff] }
  0xfa   :  { %v746_v50 = vld [vmem:[%s5261_s1 + $0x8a0] sm:$0xff]  ;;  %v748_v11 = vld [vmem:[%s5261_s1 + $0x8b0] sm:$0xff] }
  0xfc   :  { %2659 = vmatpush1.bf16.msra.mxu0 %v2658_v57  ;;  %v733_v57 = vld [vmem:[%s5261_s1 + $0x838] sm:$0xff] }
  0xfd   :  { %2661 = vmatprep.subr.bf16.mxu0 %v2660_v29  ;;  %v430_v29 = vsel %vm427_vm1, %v428_v30, %v429_v15  ;;  %v2672_v43 = vpack.c.bf16 %v733_v57, %v731_v54  ;;  %v2678_v15 = vpack.c.bf16 %v736_v34, %v734_v58  ;;  %v743_v54 = vld [vmem:[%s5261_s1 + $0x888] sm:$0xff]  ;;  %v2682_v57 = vpack.c.bf16 %v740_v55, %v738_v14  ;;  %v752_v58 = vld [vmem:[%s5261_s1 + $0x8d0] sm:$0xff] }
  0xfe   :  { %v755_v34 = vld [vmem:[%s5261_s1 + $0x8e8] sm:$0xff] }
 0x100   :  { %2663 = vmatpush1.bf16.msra.mxu0 %v2662_v56  ;;  %v446_v56 = vsel %vm427_vm1, %v443_v28, %v445_v51  ;;  %v433_v28 = vrot.slane %v3980_v37, 2  ;;  %v739_v37 = vld [vmem:[%s5261_s1 + $0x868] sm:$0xff]  ;;  %v451_v51 = vsel %vm427_vm1, %v448_v31, %v450_v13 }
 0x101   :  { %2665 = vmatprep.subr.bf16.mxu0 %v2664_v33  ;;  %v447_v33 = vrot.slane %v4472_v10, 2  ;;  %v434_v10 = vrot.slane %v3985_v49, 2  ;;  %v741_v49 = vld [vmem:[%s5261_s1 + $0x878] sm:$0xff] }
 0x102   :  { %v2680_v35 = vpack.c.bf16 %v741_v49, %v739_v37  ;;  %v754_v49 = vld [vmem:[%s5261_s1 + $0x8e0] sm:$0xff] }
 0x103   :  { %v449_v30 = vsel %vm427_vm1, %v447_v33, %v448_v31  ;;  %v2963_v33 = vmov 0.0   ;;  %v2688_v31 = vpack.c.bf16 %v749_v41, %v747_v40 }
 0x104   :  { %2667 = vmatpush1.bf16.msra.mxu0 %v2666_v59  ;;  %v435_v59 = vsel %vm427_vm1, %v433_v28, %v434_v10  ;;  %v2690_v28 = vpack.c.bf16 %v748_v11, %v746_v50 }
 0x105   :  { %2669 = vmatprep.subr.bf16.mxu0 %v2668_v60  ;;  %v436_v60 = vrot.slane %v4027_v38, 2  ;;  %v745_v38 = vld [vmem:[%s5261_s1 + $0x898] sm:$0xff] }
 0x107   :  { %1090 = vmatmul.mubr.f32.vlgmr.msra.gmra.mrb[0].mxu0 %v430_v29  ;;  %v437_v29 = vsel %vm427_vm1, %v434_v10, %v436_v60  ;;  %v1227_v60 = vld [vmem:[%s5262_s2 + $0x60] sm:$0xff] }
 0x108   :  { %2671 = vmatpush1.bf16.msra.mxu0 %v2670_v61  ;;  %1095 = vmatprep.mubr.f32.mxu0 %v446_v56  ;;  %v2684_v61 = vpack.c.bf16 %v745_v38, %v743_v54 }
 0x109   :  { %2673 = vmatprep.subr.bf16.mxu0 %v2672_v43  ;;  %v744_v43 = vld [vmem:[%s5261_s1 + $0x890] sm:$0xff] }
 0x10a   :  { %v2686_v56 = vpack.c.bf16 %v744_v43, %v742_v36 }
 0x10b   :  { %1096 = vmatmul.mubr.f32.gmra.mrb[2].mxu0 %v432_v48  ;;  %v753_v48 = vld [vmem:[%s5261_s1 + $0x8d8] sm:$0xff] }
 0x10c   :  { %2675 = vmatpush1.bf16.msra.mxu0 %v2674_v12  ;;  %1101 = vmatprep.mubr.f32.mxu0 %v449_v30  ;;  %v751_v12 = vld [vmem:[%s5261_s1 + $0x8c8] sm:$0xff]  ;;  %v757_v30 = vld [vmem:[%s5261_s1 + $0x8f8] sm:$0xff] }
 0x10d   :  { %2677 = vmatprep.subr.bf16.mxu0 %v2676_v42  ;;  %v2692_v10 = vpack.c.bf16 %v753_v48, %v751_v12  ;;  %v750_v42 = vld [vmem:[%s5261_s1 + $0x8c0] sm:$0xff]  ;;  %v2696_v37 = vpack.c.bf16 %v757_v30, %v755_v34 }
 0x10e   :  { %v2694_v13 = vpack.c.bf16 %v752_v58, %v750_v42 }
 0x10f   :  { %1102 = vmatmul.mubr.f32.gmra.mrb[4].mxu0 %v435_v59 }
 0x110   :  { %2679 = vmatpush1.bf16.msra.mxu0 %v2678_v15  ;;  %1107 = vmatprep.mubr.f32.mxu0 %v451_v51  ;;  %v756_v15 = vld [vmem:[%s5261_s1 + $0x8f0] sm:$0xff] }
 0x111   :  { %2681 = vmatprep.subr.bf16.mxu0 %v2680_v35  ;;  %v2698_v59 = vpack.c.bf16 %v756_v15, %v754_v49  ;;  %v1228_v35 = vld [vmem:[%s5262_s2 + $0x68] sm:$0xff] }
 0x112   :  { %v2724_v14 = vpack.c.bf16 %v1228_v35, %v1227_v60 }
 0x113   :  { %1108 = vmatmul.mubr.f32.gmra.mrb[6].mxu0 %v437_v29 }
 0x114   :  { %2683 = vmatpush1.bf16.msra.mxu0 %v2682_v57  ;;  %1178 = vmatprep.mubr.f32.mxu0 %v2963_v33 }
 0x115   :  { %2685 = vmatprep.subr.bf16.mxu0 %v2684_v61  ;;  %2725 = vmatprep.subr.bf16.mxu1 %v2724_v14 }
 0x116   :  { %2727 = vmatpush3.bf16.msra.mxu1 %v2724_v14  ;;  %v2086_v14 = vld [vmem:[%s5263_s3] ss:$0 sm:$0xff]  ;;  %s2964_s3 = smov 8  }
 0x118   :  { %2687 = vmatpush1.bf16.msra.mxu0 %v2686_v56 }
 0x119   :  { %2689 = vmatprep.subr.bf16.mxu0 %v2688_v31 }
 0x11c   :  { %2691 = vmatpush1.bf16.msra.mxu0 %v2690_v28 }
 0x11d   :  { %2693 = vmatprep.subr.bf16.mxu0 %v2692_v10 }
 0x120   :  { %2695 = vmatpush1.bf16.msra.mxu0 %v2694_v13 }
 0x121   :  { %2697 = vmatprep.subr.bf16.mxu0 %v2696_v37 }
 0x124   :  { %2699 = vmatpush1.bf16.msra.mxu0 %v2698_v59 }
 0x127   :  { %1179 = vmatmul.mubr.f32.vlgmr.msra.gmra.mrb[0].mxu0 %v4242_v32  ;;  %v1229_v32 = vld [vmem:[%s5262_s2 + $0x70] sm:$0xff] }
 0x128   :  { %1184 = vmatprep.mubr.f32.mxu0 %v2963_v33 }
 0x12b   :  { %1185 = vmatmul.mubr.f32.gmra.mrb[2].mxu0 %v4289_v52  ;;  %v1230_v52 = vld [vmem:[%s5262_s2 + $0x78] sm:$0xff] }
 0x12c   :  { %1190 = vmatprep.mubr.f32.mxu0 %v2963_v33 }
 0x12f   :  { %1191 = vmatmul.mubr.f32.gmra.mrb[4].mxu0 %v4304_v53  ;;  %v2728_v53 = vpack.c.bf16 %v1230_v52, %v1229_v32 }
 0x130   :  { %1196 = vmatprep.mubr.f32.mxu0 %v2963_v33 }
 0x131   :  { %2729 = vmatprep.subr.bf16.mxu1 %v2728_v53 }
 0x132   :  { %2731 = vmatpush3.bf16.msra.mxu1 %v2728_v53 }
 0x133   :  { %1197 = vmatmul.mubr.f32.gmra.mrb[6].mxu0 %v4349_v39 }
 0x194   :  { %v824_v39 = vpop.f32.mrb[0].mxu1 }
 0x195   :  { %v826_v55 = vpop.f32.mrb[1].mxu1 }
 0x198   :  { %v830_v51 = vpop.f32.mrb[2].mxu1 }
 0x199   :  { %v832_v54 = vpop.f32.mrb[3].mxu1 }
 0x19c   :  { %v836_v38 = vpop.f32.mrb[4].mxu1 }
 0x19d   :  { %v838_v57 = vpop.f32.mrb[5].mxu1 }
 0x1a0   :  { %v842_v29 = vpop.f32.mrb[6].mxu1 }
 0x1a1   :  { %v844_v61 = vpop.f32.mrb[7].mxu1 }
 0x1fa   :  { %v1180_v36 = vpop.f32.mrb[0].mxu0 }
 0x1fb   :  { %v2908_v43 = vadd.f32 %v1180_v36, %v824_v39  ;;  %v1182_v40 = vpop.f32.mrb[1].mxu0 }
 0x1fc   :  { %v2909_v41 = vadd.f32 %v1182_v40, %v826_v55 }
 0x1fd   :  { %v1207_v56 = vmul.f32 0.2, %v2908_v43  ;;  %vm1203_vm2 = vcmp.ge.f32.partialorder %v2908_v43, 0.0 }
 0x1fe   :  { %v1186_v33 = vpop.f32.mrb[2].mxu0 }
 0x1ff   :  { %v2910_v31 = vadd.f32 %v1186_v33, %v830_v51  ;;  %v1188_v50 = vpop.f32.mrb[3].mxu0  ;;  %v1211_v11 = vsel %vm1203_vm2, %v2908_v43, %v1207_v56 }
 0x200   :  { %v2911_v12 = vadd.f32 %v1188_v50, %v832_v54  ;;  %2368 = vmatprep.mubr.f32.mxu1 %v1211_v11 }
 0x201   :  { %vm1204_vm3 = vcmp.ge.f32.partialorder %v2910_v31, 0.0  ;;  %v1208_v48 = vmul.f32 0.2, %v2910_v31 }
 0x202   :  { %v1192_v28 = vpop.f32.mrb[4].mxu0 }
 0x203   :  { %v1212_v10 = vsel %vm1204_vm3, %v2910_v31, %v1208_v48  ;;  %v2912_v42 = vadd.f32 %v1192_v28, %v836_v38  ;;  %v1194_v58 = vpop.f32.mrb[5].mxu0 }
 0x204   :  { %v4818_v34 = vadd.f32 %v1194_v58, %v838_v57  ;;  %2369 = vmatmul.mubr.f32.vlgmr.msra.gmra.mrb[8].mxu1 %v1212_v10 }
 0x205   :  { %v1209_v30 = vmul.f32 0.2, %v2912_v42  ;;  %vm1205_vm4 = vcmp.ge.f32.partialorder %v2912_v42, 0.0 }
 0x206   :  { %v1198_v13 = vpop.f32.mrb[6].mxu0 }
 0x207   :  { %v2914_v37 = vadd.f32 %v1198_v13, %v842_v29  ;;  %v1200_v49 = vpop.f32.mrb[7].mxu0  ;;  %v1213_v15 = vsel %vm1205_vm4, %v2912_v42, %v1209_v30 }
 0x208   :  { %v2915_v59 = vadd.f32 %v1200_v49, %v844_v61  ;;  %2371 = vmatprep.mubr.f32.mxu1 %v1213_v15 }
 0x209   :  { %v1210_v60 = vmul.f32 0.2, %v2914_v37  ;;  %vm1206_vm5 = vcmp.ge.f32.partialorder %v2914_v37, 0.0 }
 0x20b   :  { %v1214_v35 = vsel %vm1206_vm5, %v2914_v37, %v1210_v60 }
 0x20c   :  { %2372 = vmatmul.mubr.f32.gmra.mrb[10].mxu1 %v1214_v35 }
 0x2d7   :  { %v2370_v32 = vpop.f32.mrb[8].mxu1 }
 0x2d8   :  { %v1310_v52 = vadd.f32 %v2370_v32, %v2086_v14  ;;  %v1304_v53 = vpop.f32.mrb[9].mxu1 }
 0x2d9   :  { %v1305_v39 = vadd.f32 %v2086_v14, %v1304_v53 }
 0x2da   :  { %v2088_v55 = vmul.f32 -1.442695, %v1310_v52 }
 0x2db   :  { %v2087_v51 = vmul.f32 -1.442695, %v1305_v39 }
 0x2dc   :  { %2943 = vpow2.f32 %v2088_v55 }
 0x2dd   :  { %2945 = vpow2.f32 %v2087_v51 }
 0x2df   :  { %v2373_v54 = vpop.f32.mrb[10].mxu1 }
 0x2e0   :  { %v1320_v38 = vadd.f32 %v2373_v54, %v2086_v14  ;;  %v1314_v57 = vpop.f32.mrb[11].mxu1 }
 0x2e1   :  { %v1315_v29 = vadd.f32 %v2086_v14, %v1314_v57 }
 0x2e2   :  { %v2090_v61 = vmul.f32 -1.442695, %v1320_v38 }
 0x2e3   :  { %v2089_v36 = vmul.f32 -1.442695, %v1315_v29 }
 0x2e4   :  { %2947 = vpow2.f32 %v2090_v61 }
 0x2e5   :  { %2949 = vpow2.f32 %v2089_v36 }
 0x2e6   :  { %v2944_v43 = vpop.eup %2943 }
 0x2e7   :  { %v2946_v40 = vpop.eup %2945  ;;  %v1336_v56 = vadd.f32 1.0, %v2944_v43 }
 0x2e8   :  { %v1335_v33 = vadd.f32 1.0, %v2946_v40 }
 0x2e9   :  { %2951 = vrcp.f32 %v1336_v56 }
 0x2ea   :  { %2953 = vrcp.f32 %v1335_v33 }
 0x2ee   :  { %v2948_v31 = vpop.eup %2947 }
 0x2ef   :  { %v2950_v50 = vpop.eup %2949  ;;  %v1338_v11 = vadd.f32 1.0, %v2948_v31 }
 0x2f0   :  { %v1337_v48 = vadd.f32 1.0, %v2950_v50 }
 0x2f1   :  { %2955 = vrcp.f32 %v1338_v11 }
 0x2f2   :  { %2957 = vrcp.f32 %v1337_v48 }
 0x2f3   :  { %v2952_v28 = vpop.eup %2951 }
 0x2f4   :  { %v2954_v10 = vpop.eup %2953  ;;  %v1348_v42 = vmul.f32 %v2952_v28, %v2911_v12 }
 0x2f5   :  { %v1347_v58 = vmul.f32 %v2954_v10, %v2909_v41 }
 0x2f6   :  { %v1357_v30 = vrot.slane %v1348_v42, 7  ;;  %v1372_v42 = vlaneseq }
 0x2f7   :  { %v4823_v13 = vrot.slane %v1347_v58, 7 }
 0x2f8   :  { %v1370_v37 = vsel %vm1355_vm6, %v1357_v30, 0.0  ;;  %v4898_v58 = vand.u32 127, %v1372_v42 }
 0x2f9   :  { %v1368_v49 = vsel %vm1355_vm6, 0.0, %v4823_v13  ;;  %v4830_v15 = vsel %vm1355_vm6, %v4823_v13, %v1357_v30  ;;  %v1407_v60 = vrot.slane %v1370_v37, 1  ;;  %v1445_v35 = vrot.slane %v1370_v37, 2  ;;  %2092 = vmatprep.mubr.msk.f32.mxu1 %vm4971_vm9, %v4823_v13 }
 0x2fa   :  { %1375 = vrot.lane.b32.xlu0 %v1368_v49, %s2964_s3  ;;  %1390 = vrot.lane.b32.xlu1 %v4830_v15, %s2965_s26  ;;  %v1405_v41 = vrot.slane %v4830_v15, 1  ;;  %v1443_v12 = vrot.slane %v4830_v15, 2  ;;  %v1404_v14 = vrot.slane %v1368_v49, 1  ;;  %v1442_v32 = vrot.slane %v1368_v49, 2 }
 0x2fb   :  { %v2956_v52 = vpop.eup %2955  ;;  %vm1374_vm7 = vcmp.ge.s32.totalorder %v4898_v58, 8  ;;  %vm1387_vm8 = vcmp.lt.s32.totalorder %v4898_v58, 120 }
 0x2fc   :  { %v2958_v53 = vpop.eup %2957  ;;  %v4838_v39 = vsel %vm372_vm0, %v1405_v41, %v1407_v60  ;;  %v4841_v55 = vsel %vm427_vm1, %v1443_v12, %v1445_v35  ;;  %v4844_v51 = vsel %vm372_vm0, %v1404_v14, %v1405_v41  ;;  %v4847_v54 = vsel %vm427_vm1, %v1442_v32, %v1443_v12 }
 0x2fd   :  { %5389 = vst [vmem:[#allocation122_spill] sm:$0xff] %v4841_v55  ;;  %v1349_v38 = vmul.f32 %v2958_v53, %v4818_v34  ;;  %v1350_v57 = vmul.f32 %v2956_v52, %v2915_v59 }
 0x2fe   :  { %1377 = vrot.lane.b32.xlu0 %v4830_v15, %s2964_s3  ;;  %1420 = vrot.lane.b32.xlu1 %v4838_v39, %s2964_s3 }
 0x2ff   :  { %v4854_v29 = vrot.slane %v1349_v38, 7  ;;  %v1360_v61 = vrot.slane %v1350_v57, 7 }
 0x301   :  { %v1369_v36 = vsel %vm1355_vm6, 0.0, %v4854_v29  ;;  %v4860_v43 = vsel %vm1355_vm6, %v4854_v29, %v1360_v61  ;;  %v1371_v40 = vsel %vm1355_vm6, %v1360_v61, 0.0 }
 0x302   :  { %1388 = vrot.lane.b32.xlu0 %v1368_v49, %s2965_s26  ;;  %1432 = vrot.lane.b32.xlu1 %v4838_v39, %s2965_s26  ;;  %v1410_v34 = vrot.slane %v4860_v43, 1  ;;  %v1412_v59 = vrot.slane %v1371_v40, 1  ;;  %v1409_v56 = vrot.slane %v1369_v36, 1  ;;  %v1448_v33 = vrot.slane %v4860_v43, 2 }
 0x303   :  { %v1450_v31 = vrot.slane %v1371_v40, 2  ;;  %v1447_v50 = vrot.slane %v1369_v36, 2 }
 0x304   :  { %v4869_v11 = vsel %vm372_vm0, %v1410_v34, %v1412_v59  ;;  %v4872_v48 = vsel %vm372_vm0, %v1409_v56, %v1410_v34 }
 0x305   :  { %v4875_v28 = vsel %vm427_vm1, %v1448_v33, %v1450_v31  ;;  %v4878_v10 = vsel %vm427_vm1, %v1447_v50, %v1448_v33 }
 0x306   :  { %5390 = vst [vmem:[#allocation123_spill] sm:$0xff] %v4875_v28  ;;  %5391 = vst [vmem:[#allocation124_spill] sm:$0xff] %v4878_v10  ;;  %1458 = vrot.lane.b32.xlu1 %v4841_v55, %s2964_s3  ;;  %1418 = vrot.lane.b32.xlu0 %v4844_v51, %s2964_s3 }
 0x30a   :  { %1470 = vrot.lane.b32.xlu1 %v4841_v55, %s2965_s26  ;;  %1430 = vrot.lane.b32.xlu0 %v4844_v51, %s2965_s26  ;;  %v2736_v55 = vpack.c.bf16 %v3094_v19, %v3089_v18 }
 0x30e   :  { %1379 = vrot.lane.b32.xlu1 %v1369_v36, %s2964_s3  ;;  %1456 = vrot.lane.b32.xlu0 %v4847_v54, %s2964_s3 }
 0x312   :  { %1381 = vrot.lane.b32.xlu1 %v4860_v43, %s2964_s3  ;;  %1468 = vrot.lane.b32.xlu0 %v4847_v54, %s2965_s26 }
 0x316   :  { %1394 = vrot.lane.b32.xlu1 %v4860_v43, %s2965_s26  ;;  %1392 = vrot.lane.b32.xlu0 %v1369_v36, %s2965_s26 }
 0x31a   :  { %1424 = vrot.lane.b32.xlu1 %v4869_v11, %s2964_s3  ;;  %1422 = vrot.lane.b32.xlu0 %v4872_v48, %s2964_s3 }
 0x31e   :  { %1436 = vrot.lane.b32.xlu1 %v4869_v11, %s2965_s26  ;;  %1434 = vrot.lane.b32.xlu0 %v4872_v48, %s2965_s26 }
 0x322   :  { %1462 = vrot.lane.b32.xlu1 %v4875_v28, %s2964_s3  ;;  %1460 = vrot.lane.b32.xlu0 %v4878_v10, %s2964_s3 }
 0x326   :  { %1474 = vrot.lane.b32.xlu1 %v4875_v28, %s2965_s26  ;;  %1472 = vrot.lane.b32.xlu0 %v4878_v10, %s2965_s26  ;;  %v2732_v10 = vpack.c.bf16 %v3084_v17, %v3079_v16 }
 0x36c   :  { %v4918_v30 = vpop.permute.xlu0 %1375  ;;  %v4920_v37 = vpop.permute.xlu1 %1390 }
 0x370   :  { %v4922_v49 = vpop.permute.xlu0 %1377  ;;  %v4924_v60 = vpop.permute.xlu1 %1420 }
 0x374   :  { %v4926_v35 = vpop.permute.xlu0 %1388  ;;  %v4928_v41 = vpop.permute.xlu1 %1432 }
 0x378   :  { %v4930_v12 = vpop.permute.xlu1 %1458  ;;  %v4932_v14 = vpop.permute.xlu0 %1418 }
 0x379   :  { %5392 = vst [vmem:[#allocation125_spill] sm:$0xff] %v4930_v12  ;;  %v2734_v12 = vpack.c.bf16 %v3004_v1, %v2999_v0 }
 0x37c   :  { %v4934_v32 = vpop.permute.xlu1 %1470  ;;  %v4936_v52 = vpop.permute.xlu0 %1430 }
 0x380   :  { %v4938_v53 = vpop.permute.xlu1 %1379  ;;  %v4940_v38 = vpop.permute.xlu0 %1456 }
 0x381   :  { %5393 = vst [vmem:[#allocation126_spill] sm:$0xff] %v4940_v38 }
 0x384   :  { %v4942_v57 = vpop.permute.xlu1 %1381  ;;  %v1469_v61 = vpop.permute.xlu0 %1468 }
 0x385   :  { %2406 = vmatprep.mubr.msk.f32.mxu0 %vm1387_vm8, %v1469_v61 }
 0x388   :  { %v4944_v36 = vpop.permute.xlu1 %1394  ;;  %v4946_v40 = vpop.permute.xlu0 %1392 }
 0x38c   :  { %v4948_v34 = vpop.permute.xlu1 %1424  ;;  %v4950_v59 = vpop.permute.xlu0 %1422 }
 0x390   :  { %v4952_v56 = vpop.permute.xlu1 %1436  ;;  %v4954_v33 = vpop.permute.xlu0 %1434 }
 0x394   :  { %v4956_v31 = vpop.permute.xlu1 %1462  ;;  %v4958_v50 = vpop.permute.xlu0 %1460 }
 0x398   :  { %v4960_v42 = vpop.permute.xlu1 %1474  ;;  %v4962_v28 = vpop.permute.xlu0 %1472 }
 0x399   :  { %2961 = dma.done.wait [#allocation3], 18432 }
 0x39a   :  { %2962 = vsyncadd [#allocation3], 4294948864  ;;  %2733 = vmatprep.subr.bf16.mxu1 %v2732_v10  ;;  %v2738_v0 = vpack.c.bf16 %v3014_v3, %v3009_v2  ;;  %v2740_v1 = vpack.c.bf16 %v3104_v21, %v3099_v20  ;;  %v2742_v16 = vpack.c.bf16 %v3024_v5, %v3019_v4  ;;  %v2744_v17 = vpack.c.bf16 %v3114_v23, %v3109_v22  ;;  %v5397_v20 = vld [vmem:[#allocation7_spill] sm:$0xff]  ;;  %v5400_v23 = vld [vmem:[#allocation112_spill] sm:$0xff] }
 0x39b   :  { %2735 = vmatpush3.bf16.msra.mxu1 %v2734_v12  ;;  %v2746_v18 = vpack.c.bf16 %v3034_v7, %v3029_v6  ;;  %v2748_v2 = vpack.c.bf16 %v3124_v25, %v3119_v24  ;;  %v4994_v3 = vpack.c.bf16 %v3644_v47, %v3639_v63  ;;  %v4998_v19 = vpack.c.bf16 %v3654_v45, %v3649_v46  ;;  %v5396_v7 = vld [vmem:[#allocation6_spill] sm:$0xff]  ;;  %v5401_v24 = vld [vmem:[#allocation113_spill] sm:$0xff]  ;;  %v5405_v46 = vld [vmem:[#allocation15_spill] sm:$0xff] }
 0x39c   :  { %2737 = vmatprep.subr.bf16.mxu1 %v2736_v55  ;;  %v2750_v4 = vpack.c.bf16 %v3044_v9, %v3039_v8  ;;  %v2752_v5 = vpack.c.bf16 %v3134_v27, %v3129_v26  ;;  %v5009_v6 = vpack.c.bf16 %v3664_v44, %v3659_v62  ;;  %v2754_v21 = vpack.c.bf16 %v5397_v20, %v5396_v7  ;;  %v5398_v8 = vld [vmem:[#allocation12_spill] sm:$0xff]  ;;  %v5399_v9 = vld [vmem:[#allocation13_spill] sm:$0xff]  ;;  %v5404_v45 = vld [vmem:[#allocation14_spill] sm:$0xff] }
 0x39d   :  { %2861 = vmatprep.subr.bf16.mxu0 %v4994_v3  ;;  %v2756_v22 = vpack.c.bf16 %v5399_v9, %v5398_v8  ;;  %v5019_v25 = vpack.c.bf16 %v5401_v24, %v5400_v23  ;;  %v5402_v26 = vld [vmem:[#allocation8_spill] sm:$0xff]  ;;  %v5403_v27 = vld [vmem:[#allocation9_spill] sm:$0xff]  ;;  %v2760_v47 = vpack.c.bf16 %v5405_v46, %v5404_v45  ;;  %v5406_v62 = vld [vmem:[#allocation114_spill] sm:$0xff] }
 0x39e   :  { %2863 = vmatpush3.bf16.msra.mxu0 %v4994_v3  ;;  %v2758_v44 = vpack.c.bf16 %v5403_v27, %v5402_v26  ;;  %v5407_v63 = vld [vmem:[#allocation115_spill] sm:$0xff]  ;;  %v5408_v55 = vld [vmem:[#allocation10_spill] sm:$0xff]  ;;  %v5410_v61 = vld [vmem:[#allocation32_spill] sm:$0xff] }
 0x39f   :  { %2739 = vmatpush3.bf16.msra.mxu1 %v2738_v0  ;;  %2865 = vmatprep.subr.bf16.mxu0 %v4998_v19  ;;  %v5029_v13 = vpack.c.bf16 %v5407_v63, %v5406_v62  ;;  %v5409_v10 = vld [vmem:[#allocation11_spill] sm:$0xff]  ;;  %v5411_v0 = vld [vmem:[#allocation33_spill] sm:$0xff]  ;;  %v5416_v7 = vld [vmem:[#allocation34_spill] sm:$0xff] }
 0x3a0   :  { %2741 = vmatprep.subr.bf16.mxu1 %v2740_v1  ;;  %v2762_v12 = vpack.c.bf16 %v5409_v10, %v5408_v55  ;;  %v2764_v1 = vpack.c.bf16 %v5411_v0, %v5410_v61  ;;  %v5417_v20 = vld [vmem:[#allocation35_spill] sm:$0xff]  ;;  %v5418_v8 = vld [vmem:[#allocation118_spill] sm:$0xff]  ;;  %v5422_v27 = vld [vmem:[#allocation36_spill] sm:$0xff] }
 0x3a1   :  { %v5419_v9 = vld [vmem:[#allocation119_spill] sm:$0xff]  ;;  %v5420_v23 = vld [vmem:[#allocation18_spill] sm:$0xff]  ;;  %v5424_v46 = vld [vmem:[#allocation120_spill] sm:$0xff] }
 0x3a2   :  { %2867 = vmatpush3.bf16.msra.mxu0 %v4998_v19  ;;  %v5421_v24 = vld [vmem:[#allocation19_spill] sm:$0xff]  ;;  %v5427_v63 = vld [vmem:[#allocation21_spill] sm:$0xff]  ;;  %v5428_v55 = vld [vmem:[#allocation38_spill] sm:$0xff] }
 0x3a3   :  { %2743 = vmatpush3.bf16.msra.mxu1 %v2742_v16  ;;  %2869 = vmatprep.subr.bf16.mxu0 %v5009_v6  ;;  %v5412_v16 = vld [vmem:[#allocation116_spill] sm:$0xff]  ;;  %v2770_v26 = vpack.c.bf16 %v5421_v24, %v5420_v23  ;;  %v5429_v10 = vld [vmem:[#allocation39_spill] sm:$0xff]  ;;  %v5433_v38 = vld [vmem:[#allocation41_spill] sm:$0xff] }
 0x3a4   :  { %2745 = vmatprep.subr.bf16.mxu1 %v2744_v17  ;;  %v5413_v17 = vld [vmem:[#allocation117_spill] sm:$0xff]  ;;  %v5431_v61 = vld [vmem:[#allocation23_spill] sm:$0xff]  ;;  %v5444_v24 = vld [vmem:[#allocation46_spill] sm:$0xff] }
 0x3a5   :  { %v5443_v23 = vld [vmem:[#allocation29_spill] sm:$0xff] }
 0x3a6   :  { %2871 = vmatpush3.bf16.msra.mxu0 %v5009_v6 }
 0x3a7   :  { %2747 = vmatpush3.bf16.msra.mxu1 %v2746_v18  ;;  %2873 = vmatprep.subr.bf16.mxu0 %v5019_v25  ;;  %v5039_v18 = vpack.c.bf16 %v5413_v17, %v5412_v16  ;;  %v5434_v16 = vld [vmem:[#allocation24_spill] sm:$0xff]  ;;  %v5435_v17 = vld [vmem:[#allocation25_spill] sm:$0xff] }
 0x3a8   :  { %2749 = vmatprep.subr.bf16.mxu1 %v2748_v2  ;;  %v5414_v2 = vld [vmem:[#allocation16_spill] sm:$0xff] }
 0x3aa   :  { %2875 = vmatpush3.bf16.msra.mxu0 %v5019_v25 }
 0x3ab   :  { %2751 = vmatpush3.bf16.msra.mxu1 %v2750_v4  ;;  %2877 = vmatprep.subr.bf16.mxu0 %v5029_v13  ;;  %v5415_v4 = vld [vmem:[#allocation17_spill] sm:$0xff] }
 0x3ac   :  { %2753 = vmatprep.subr.bf16.mxu1 %v2752_v5  ;;  %v2766_v5 = vpack.c.bf16 %v5415_v4, %v5414_v2  ;;  %v5437_v2 = vld [vmem:[#allocation43_spill] sm:$0xff] }
 0x3ae   :  { %2879 = vmatpush3.bf16.msra.mxu0 %v5029_v13 }
 0x3af   :  { %2755 = vmatpush3.bf16.msra.mxu1 %v2754_v21  ;;  %v2768_v21 = vpack.c.bf16 %v5417_v20, %v5416_v7  ;;  %2881 = vmatprep.subr.bf16.mxu0 %v5039_v18  ;;  %v5439_v7 = vld [vmem:[#allocation27_spill] sm:$0xff]  ;;  %v5440_v20 = vld [vmem:[#allocation44_spill] sm:$0xff] }
 0x3b0   :  { %2757 = vmatprep.subr.bf16.mxu1 %v2756_v22  ;;  %v5049_v22 = vpack.c.bf16 %v5419_v9, %v5418_v8  ;;  %v5442_v9 = vld [vmem:[#allocation28_spill] sm:$0xff] }
 0x3b2   :  { %2883 = vmatpush3.bf16.msra.mxu0 %v5039_v18 }
 0x3b3   :  { %2759 = vmatpush3.bf16.msra.mxu1 %v2758_v44  ;;  %v5423_v44 = vld [vmem:[#allocation37_spill] sm:$0xff]  ;;  %2885 = vmatprep.subr.bf16.mxu0 %v5049_v22 }
 0x3b4   :  { %2761 = vmatprep.subr.bf16.mxu1 %v2760_v47  ;;  %v2772_v45 = vpack.c.bf16 %v5423_v44, %v5422_v27  ;;  %v5425_v47 = vld [vmem:[#allocation121_spill] sm:$0xff]  ;;  %v5446_v44 = vld [vmem:[#allocation30_spill] sm:$0xff] }
 0x3b5   :  { %v5063_v62 = vpack.c.bf16 %v5425_v47, %v5424_v46  ;;  %v5448_v46 = vld [vmem:[#allocation64_spill] sm:$0xff]  ;;  %v5449_v47 = vld [vmem:[#allocation65_spill] sm:$0xff] }
 0x3b6   :  { %2887 = vmatpush3.bf16.msra.mxu0 %v5049_v22 }
 0x3b7   :  { %2763 = vmatpush3.bf16.msra.mxu1 %v2762_v12  ;;  %v2776_v12 = vpack.c.bf16 %v5429_v10, %v5428_v55  ;;  %2889 = vmatprep.subr.bf16.mxu0 %v5063_v62  ;;  %v5452_v10 = vld [vmem:[#allocation66_spill] sm:$0xff] }
 0x3b8   :  { %2765 = vmatprep.subr.bf16.mxu1 %v2764_v1 }
 0x3ba   :  { %2093 = vmatmul.mubr.msk.f32.vlgmr.msra.gmra.mrb[12].mxu1 %vm1374_vm7, %v4918_v30  ;;  %v5426_v30 = vld [vmem:[#allocation20_spill] sm:$0xff]  ;;  %2891 = vmatpush3.bf16.msra.mxu0 %v5063_v62 }
 0x3bb   :  { %2767 = vmatpush3.bf16.msra.mxu1 %v2766_v5  ;;  %1696 = vmatprep.mubr.f32.mxu1 %v4830_v15  ;;  %v2774_v15 = vpack.c.bf16 %v5427_v63, %v5426_v30  ;;  %v5438_v5 = vld [vmem:[#allocation26_spill] sm:$0xff]  ;;  %v2796_v30 = vpack.c.bf16 %v5449_v47, %v5448_v46  ;;  %v5450_v63 = vld [vmem:[#allocation48_spill] sm:$0xff]  ;;  %v5477_v47 = vld [vmem:[#allocation79_spill] sm:$0xff] }
 0x3bc   :  { %2769 = vmatprep.subr.bf16.mxu1 %v2768_v21  ;;  %v5441_v21 = vld [vmem:[#allocation45_spill] sm:$0xff]  ;;  %v5476_v46 = vld [vmem:[#allocation78_spill] sm:$0xff] }
 0x3bd   :  { %2407 = vmatmul.mubr.msk.f32.vlgmr.msra.gmra.mrb[8].mxu0 %vm1387_vm8, %v4934_v32  ;;  %v2788_v8 = vpack.c.bf16 %v5441_v21, %v5440_v20  ;;  %v5466_v20 = vld [vmem:[#allocation56_spill] sm:$0xff]  ;;  %v5467_v21 = vld [vmem:[#allocation57_spill] sm:$0xff] }
 0x3be   :  { %2094 = vmatmul.mubr.msk.f32.gmra.mrb[14].mxu1 %vm1374_vm7, %v4922_v49  ;;  %v5430_v49 = vld [vmem:[#allocation22_spill] sm:$0xff] }
 0x3bf   :  { %2771 = vmatpush3.bf16.msra.mxu1 %v2770_v26  ;;  %2096 = vmatprep.mubr.msk.f32.mxu1 %vm4971_vm9, %v4854_v29  ;;  %v2778_v0 = vpack.c.bf16 %v5431_v61, %v5430_v49  ;;  %v5432_v29 = vld [vmem:[#allocation40_spill] sm:$0xff]  ;;  %v5445_v26 = vld [vmem:[#allocation47_spill] sm:$0xff]  ;;  %v5454_v61 = vld [vmem:[#allocation50_spill] sm:$0xff] }
 0x3c0   :  { %2773 = vmatprep.subr.bf16.mxu1 %v2772_v45  ;;  %v2780_v1 = vpack.c.bf16 %v5433_v38, %v5432_v29  ;;  %v2792_v27 = vpack.c.bf16 %v5445_v26, %v5444_v24  ;;  %v5447_v45 = vld [vmem:[#allocation31_spill] sm:$0xff]  ;;  %v5456_v38 = vld [vmem:[#allocation68_spill] sm:$0xff] }
 0x3c1   :  { %v2794_v32 = vpack.c.bf16 %v5447_v45, %v5446_v44  ;;  %v5472_v26 = vld [vmem:[#allocation76_spill] sm:$0xff]  ;;  %v5475_v45 = vld [vmem:[#allocation61_spill] sm:$0xff] }
 0x3c2   :  { %2097 = vmatmul.mubr.msk.f32.gmra.mrb[16].mxu1 %vm1374_vm7, %v4938_v53  ;;  %v2782_v53 = vpack.c.bf16 %v5435_v17, %v5434_v16  ;;  %v5459_v17 = vld [vmem:[#allocation53_spill] sm:$0xff]  ;;  %v5474_v44 = vld [vmem:[#allocation60_spill] sm:$0xff] }
 0x3c3   :  { %2775 = vmatpush3.bf16.msra.mxu1 %v2774_v15  ;;  %1706 = vmatprep.mubr.f32.mxu1 %v4860_v43  ;;  %v5436_v43 = vld [vmem:[#allocation42_spill] sm:$0xff]  ;;  %v5451_v15 = vld [vmem:[#allocation49_spill] sm:$0xff] }
 0x3c4   :  { %2777 = vmatprep.subr.bf16.mxu1 %v2776_v12  ;;  %v2784_v4 = vpack.c.bf16 %v5437_v2, %v5436_v43  ;;  %v2798_v55 = vpack.c.bf16 %v5451_v15, %v5450_v63  ;;  %v5453_v12 = vld [vmem:[#allocation67_spill] sm:$0xff] }
 0x3c5   :  { %v2800_v49 = vpack.c.bf16 %v5453_v12, %v5452_v10  ;;  %v5461_v43 = vld [vmem:[#allocation71_spill] sm:$0xff]  ;;  %v5481_v10 = vld [vmem:[#allocation97_spill] sm:$0xff] }
 0x3c6   :  { %2098 = vmatmul.mubr.msk.f32.gmra.mrb[18].mxu1 %vm1374_vm7, %v4942_v57  ;;  %v2786_v57 = vpack.c.bf16 %v5439_v7, %v5438_v5  ;;  %v5465_v7 = vld [vmem:[#allocation73_spill] sm:$0xff]  ;;  %v5479_v63 = vld [vmem:[#allocation63_spill] sm:$0xff] }
 0x3c7   :  { %2779 = vmatpush3.bf16.msra.mxu1 %v2778_v0  ;;  %2099 = vmatprep.mubr.msk.f32.mxu1 %vm1374_vm7, %v4932_v14  ;;  %v2790_v14 = vpack.c.bf16 %v5443_v23, %v5442_v9  ;;  %v5455_v0 = vld [vmem:[#allocation51_spill] sm:$0xff]  ;;  %v5470_v23 = vld [vmem:[#allocation58_spill] sm:$0xff] }
 0x3c8   :  { %2781 = vmatprep.subr.bf16.mxu1 %v2780_v1  ;;  %v2802_v29 = vpack.c.bf16 %v5455_v0, %v5454_v61  ;;  %v5457_v1 = vld [vmem:[#allocation69_spill] sm:$0xff] }
 0x3c9   :  { %v2804_v16 = vpack.c.bf16 %v5457_v1, %v5456_v38  ;;  %v5483_v61 = vld [vmem:[#allocation81_spill] sm:$0xff]  ;;  %v5485_v38 = vld [vmem:[#allocation99_spill] sm:$0xff] }
 0x3cb   :  { %2783 = vmatpush3.bf16.msra.mxu1 %v2782_v53 }
 0x3cc   :  { %2785 = vmatprep.subr.bf16.mxu1 %v2784_v4  ;;  %v5463_v4 = vld [vmem:[#allocation55_spill] sm:$0xff] }
 0x3cf   :  { %2787 = vmatpush3.bf16.msra.mxu1 %v2786_v57 }
 0x3d0   :  { %2789 = vmatprep.subr.bf16.mxu1 %v2788_v8  ;;  %v5469_v8 = vld [vmem:[#allocation75_spill] sm:$0xff] }
 0x3d3   :  { %2791 = vmatpush3.bf16.msra.mxu1 %v2790_v14  ;;  %v5471_v14 = vld [vmem:[#allocation59_spill] sm:$0xff] }
 0x3d4   :  { %2793 = vmatprep.subr.bf16.mxu1 %v2792_v27  ;;  %v2818_v24 = vpack.c.bf16 %v5471_v14, %v5470_v23  ;;  %v5473_v27 = vld [vmem:[#allocation77_spill] sm:$0xff]  ;;  %v5503_v23 = vld [vmem:[#allocation91_spill] sm:$0xff] }
 0x3d7   :  { %2795 = vmatpush3.bf16.msra.mxu1 %v2794_v32  ;;  %v2822_v32 = vpack.c.bf16 %v5475_v45, %v5474_v44  ;;  %v5508_v45 = vld [vmem:[#allocation110_spill] sm:$0xff] }
 0x3d8   :  { %2797 = vmatprep.subr.bf16.mxu1 %v2796_v30  ;;  %v5478_v30 = vld [vmem:[#allocation62_spill] sm:$0xff] }
 0x3d9   :  { %v2826_v15 = vpack.c.bf16 %v5479_v63, %v5478_v30  ;;  %v5512_v30 = vld [vmem:[#allocation126_spill] sm:$0xff] }
 0x3da   :  { %2100 = vmatmul.mubr.msk.f32.vlgmr.msra.gmra.mrb[20].mxu1 %vm1387_vm8, %v4926_v35  ;;  %v5458_v35 = vld [vmem:[#allocation52_spill] sm:$0xff]  ;;  %v5513_v63 = vld [vmem:[#allocation122_spill] sm:$0xff] }
 0x3db   :  { %2799 = vmatpush3.bf16.msra.mxu1 %v2798_v55  ;;  %2101 = vmatprep.mubr.msk.f32.mxu1 %vm1374_vm7, %v4924_v60  ;;  %v2806_v53 = vpack.c.bf16 %v5459_v17, %v5458_v35  ;;  %v5460_v60 = vld [vmem:[#allocation70_spill] sm:$0xff]  ;;  %v5480_v55 = vld [vmem:[#allocation96_spill] sm:$0xff]  ;;  %v5487_v35 = vld [vmem:[#allocation83_spill] sm:$0xff] }
 0x3dc   :  { %2801 = vmatprep.subr.bf16.mxu1 %v2800_v49  ;;  %v2808_v2 = vpack.c.bf16 %v5461_v43, %v5460_v60  ;;  %v2828_v12 = vpack.c.bf16 %v5481_v10, %v5480_v55  ;;  %v5482_v49 = vld [vmem:[#allocation80_spill] sm:$0xff]  ;;  %v5489_v60 = vld [vmem:[#allocation101_spill] sm:$0xff] }
 0x3dd   :  { %v2830_v0 = vpack.c.bf16 %v5483_v61, %v5482_v49  ;;  %v5515_v55 = vld [vmem:[#allocation124_spill] sm:$0xff] }
 0x3de   :  { %2102 = vmatmul.mubr.msk.f32.gmra.mrb[22].mxu1 %vm1387_vm8, %v4920_v37  ;;  %v5462_v37 = vld [vmem:[#allocation54_spill] sm:$0xff] }
 0x3df   :  { %2803 = vmatpush3.bf16.msra.mxu1 %v2802_v29  ;;  %2103 = vmatprep.mubr.msk.f32.mxu1 %vm1374_vm7, %v4950_v59  ;;  %v2810_v5 = vpack.c.bf16 %v5463_v4, %v5462_v37  ;;  %v5464_v59 = vld [vmem:[#allocation72_spill] sm:$0xff]  ;;  %v5484_v29 = vld [vmem:[#allocation98_spill] sm:$0xff] }
 0x3e0   :  { %2805 = vmatprep.subr.bf16.mxu1 %v2804_v16  ;;  %v2812_v57 = vpack.c.bf16 %v5465_v7, %v5464_v59  ;;  %v2832_v1 = vpack.c.bf16 %v5485_v38, %v5484_v29  ;;  %v5486_v16 = vld [vmem:[#allocation82_spill] sm:$0xff]  ;;  %v5495_v59 = vld [vmem:[#allocation87_spill] sm:$0xff] }
 0x3e1   :  { %v2834_v17 = vpack.c.bf16 %v5487_v35, %v5486_v16  ;;  %v5492_v4 = vld [vmem:[#allocation102_spill] sm:$0xff] }
 0x3e2   :  { %2104 = vmatmul.mubr.msk.f32.gmra.mrb[24].mxu1 %vm1387_vm8, %v4946_v40  ;;  %v2814_v40 = vpack.c.bf16 %v5467_v21, %v5466_v20  ;;  %v5498_v21 = vld [vmem:[#allocation88_spill] sm:$0xff] }
 0x3e3   :  { %2807 = vmatpush3.bf16.msra.mxu1 %v2806_v53  ;;  %2105 = vmatprep.mubr.msk.f32.mxu1 %vm1374_vm7, %v4948_v34  ;;  %v5468_v34 = vld [vmem:[#allocation74_spill] sm:$0xff]  ;;  %v5488_v53 = vld [vmem:[#allocation100_spill] sm:$0xff] }
 0x3e4   :  { %2809 = vmatprep.subr.bf16.mxu1 %v2808_v2  ;;  %v2816_v9 = vpack.c.bf16 %v5469_v8, %v5468_v34  ;;  %v2836_v43 = vpack.c.bf16 %v5489_v60, %v5488_v53  ;;  %v5491_v2 = vld [vmem:[#allocation85_spill] sm:$0xff]  ;;  %v5501_v8 = vld [vmem:[#allocation107_spill] sm:$0xff] }
 0x3e6   :  { %2106 = vmatmul.mubr.msk.f32.gmra.mrb[26].mxu1 %vm1387_vm8, %v4944_v36  ;;  %v2820_v36 = vpack.c.bf16 %v5473_v27, %v5472_v26  ;;  %v5505_v26 = vld [vmem:[#allocation109_spill] sm:$0xff] }
 0x3e7   :  { %2811 = vmatpush3.bf16.msra.mxu1 %v2810_v5  ;;  %2107 = vmatprep.mubr.msk.f32.mxu1 %vm1387_vm8, %v4936_v52  ;;  %v2824_v52 = vpack.c.bf16 %v5477_v47, %v5476_v46  ;;  %v5510_v46 = vld [vmem:[#allocation94_spill] sm:$0xff]  ;;  %v5511_v47 = vld [vmem:[#allocation95_spill] sm:$0xff] }
 0x3e8   :  { %2813 = vmatprep.subr.bf16.mxu1 %v2812_v57  ;;  %v5496_v57 = vld [vmem:[#allocation104_spill] sm:$0xff] }
 0x3eb   :  { %2815 = vmatpush3.bf16.msra.mxu1 %v2814_v40  ;;  %v5499_v40 = vld [vmem:[#allocation89_spill] sm:$0xff] }
 0x3ec   :  { %2817 = vmatprep.subr.bf16.mxu1 %v2816_v9  ;;  %v2846_v34 = vpack.c.bf16 %v5499_v40, %v5498_v21 }
 0x3ef   :  { %2819 = vmatpush3.bf16.msra.mxu1 %v2818_v24  ;;  %v5504_v24 = vld [vmem:[#allocation108_spill] sm:$0xff] }
 0x3f0   :  { %2821 = vmatprep.subr.bf16.mxu1 %v2820_v36  ;;  %v2852_v27 = vpack.c.bf16 %v5505_v26, %v5504_v24  ;;  %v5507_v36 = vld [vmem:[#allocation93_spill] sm:$0xff] }
 0x3f3   :  { %2823 = vmatpush3.bf16.msra.mxu1 %v2822_v32  ;;  %v5509_v32 = vld [vmem:[#allocation111_spill] sm:$0xff] }
 0x3f4   :  { %2825 = vmatprep.subr.bf16.mxu1 %v2824_v52  ;;  %v2858_v52 = vpack.c.bf16 %v5511_v47, %v5510_v46 }
 0x3f7   :  { %2827 = vmatpush3.bf16.msra.mxu1 %v2826_v15  ;;  %v5514_v15 = vld [vmem:[#allocation125_spill] sm:$0xff] }
 0x3f8   :  { %2829 = vmatprep.subr.bf16.mxu1 %v2828_v12 }
 0x3fa   :  { %1862 = vmatmul.mubr.f32.vlgmr.msra.gmra.mrb[28].mxu1 %v4844_v51  ;;  %v5490_v51 = vld [vmem:[#allocation84_spill] sm:$0xff] }
 0x3fb   :  { %2831 = vmatpush3.bf16.msra.mxu1 %v2830_v0  ;;  %2108 = vmatprep.mubr.msk.f32.mxu1 %vm1387_vm8, %v4928_v41  ;;  %v2838_v37 = vpack.c.bf16 %v5491_v2, %v5490_v51  ;;  %v5493_v41 = vld [vmem:[#allocation103_spill] sm:$0xff] }
 0x3fc   :  { %2833 = vmatprep.subr.bf16.mxu1 %v2832_v1  ;;  %v2840_v5 = vpack.c.bf16 %v5493_v41, %v5492_v4 }
 0x3fe   :  { %1867 = vmatmul.mubr.f32.gmra.mrb[30].mxu1 %v4838_v39  ;;  %v5494_v39 = vld [vmem:[#allocation86_spill] sm:$0xff] }
 0x3ff   :  { %2835 = vmatpush3.bf16.msra.mxu1 %v2834_v17  ;;  %2109 = vmatprep.mubr.msk.f32.mxu1 %vm1387_vm8, %v4954_v33  ;;  %v2842_v7 = vpack.c.bf16 %v5495_v59, %v5494_v39  ;;  %v5497_v33 = vld [vmem:[#allocation105_spill] sm:$0xff] }
 0x400   :  { %2837 = vmatprep.subr.bf16.mxu1 %v2836_v43  ;;  %v2844_v20 = vpack.c.bf16 %v5497_v33, %v5496_v57 }
 0x402   :  { %1872 = vmatmul.mubr.f32.gmra.mrb[32].mxu1 %v4872_v48  ;;  %v5500_v48 = vld [vmem:[#allocation106_spill] sm:$0xff] }
 0x403   :  { %2839 = vmatpush3.bf16.msra.mxu1 %v2838_v37  ;;  %2110 = vmatprep.mubr.msk.f32.mxu1 %vm1387_vm8, %v4952_v56  ;;  %v2848_v9 = vpack.c.bf16 %v5501_v8, %v5500_v48  ;;  %v5502_v56 = vld [vmem:[#allocation90_spill] sm:$0xff] }
 0x404   :  { %2841 = vmatprep.subr.bf16.mxu1 %v2840_v5  ;;  %v2850_v14 = vpack.c.bf16 %v5503_v23, %v5502_v56 }
 0x406   :  { %1877 = vmatmul.mubr.f32.gmra.mrb[34].mxu1 %v4869_v11  ;;  %v5506_v11 = vld [vmem:[#allocation92_spill] sm:$0xff] }
 0x407   :  { %2843 = vmatpush3.bf16.msra.mxu1 %v2842_v7  ;;  %1946 = vmatprep.mubr.f32.mxu1 %v4847_v54  ;;  %v2854_v44 = vpack.c.bf16 %v5507_v36, %v5506_v11  ;;  %v2856_v54 = vpack.c.bf16 %v5509_v32, %v5508_v45 }
 0x408   :  { %2845 = vmatprep.subr.bf16.mxu1 %v2844_v20 }
 0x40b   :  { %2847 = vmatpush3.bf16.msra.mxu1 %v2846_v34 }
 0x40c   :  { %2849 = vmatprep.subr.bf16.mxu1 %v2848_v9 }
 0x40f   :  { %2851 = vmatpush3.bf16.msra.mxu1 %v2850_v14 }
 0x410   :  { %2853 = vmatprep.subr.bf16.mxu1 %v2852_v27 }
 0x413   :  { %2855 = vmatpush3.bf16.msra.mxu1 %v2854_v44 }
 0x414   :  { %2857 = vmatprep.subr.bf16.mxu1 %v2856_v54 }
 0x417   :  { %2859 = vmatpush3.bf16.msra.mxu1 %v2858_v52 }
 0x418   :  { %2892 = vmatprep.subr.bf16.mxu1 %v4994_v3 }
 0x41a   :  { %2111 = vmatmul.mubr.msk.f32.vlgmr.msra.gmra.mrb[36].mxu1 %vm1374_vm7, %v5512_v30 }
 0x41b   :  { %2900 = vmatpush3.bf16.msra.mxu1 %v4994_v3  ;;  %1951 = vmatprep.mubr.f32.mxu1 %v5513_v63  ;;  %v5516_v3 = vld [vmem:[#allocation123_spill] sm:$0xff] }
 0x41c   :  { %2893 = vmatprep.subr.bf16.mxu1 %v4998_v19 }
 0x41e   :  { %2112 = vmatmul.mubr.msk.f32.gmra.mrb[38].mxu1 %vm1374_vm7, %v5514_v15 }
 0x41f   :  { %2901 = vmatpush3.bf16.msra.mxu1 %v4998_v19  ;;  %1956 = vmatprep.mubr.f32.mxu1 %v5515_v55 }
 0x420   :  { %2894 = vmatprep.subr.bf16.mxu1 %v5009_v6 }
 0x422   :  { %2113 = vmatmul.mubr.msk.f32.gmra.mrb[40].mxu1 %vm1374_vm7, %v4958_v50 }
 0x423   :  { %2902 = vmatpush3.bf16.msra.mxu1 %v5009_v6  ;;  %1961 = vmatprep.mubr.f32.mxu1 %v5516_v3 }
 0x424   :  { %2895 = vmatprep.subr.bf16.mxu1 %v5019_v25 }
 0x426   :  { %2114 = vmatmul.mubr.msk.f32.gmra.mrb[42].mxu1 %vm1374_vm7, %v4956_v31 }
 0x427   :  { %2903 = vmatpush3.bf16.msra.mxu1 %v5019_v25  ;;  %2409 = vmatprep.mubr.msk.f32.mxu1 %vm1387_vm8, %v4962_v28 }
 0x428   :  { %2896 = vmatprep.subr.bf16.mxu1 %v5029_v13 }
 0x42b   :  { %2904 = vmatpush3.bf16.msra.mxu1 %v5029_v13 }
 0x42c   :  { %2897 = vmatprep.subr.bf16.mxu1 %v5039_v18 }
 0x42f   :  { %2905 = vmatpush3.bf16.msra.mxu1 %v5039_v18 }
 0x430   :  { %2898 = vmatprep.subr.bf16.mxu1 %v5049_v22 }
 0x433   :  { %2906 = vmatpush3.bf16.msra.mxu1 %v5049_v22 }
 0x434   :  { %2899 = vmatprep.subr.bf16.mxu1 %v5063_v62 }
 0x437   :  { %2907 = vmatpush3.bf16.msra.mxu1 %v5063_v62 }
 0x43a   :  { %2410 = vmatmul.mubr.msk.f32.vlgmr.msra.gmra.mrb[44].mxu1 %vm1387_vm8, %v4960_v42 }
 0x48d   :  { %v2172_v28 = vpop.f32.mrb[12].mxu1 }
 0x48e   :  { %v2173_v31 = vpop.f32.mrb[13].mxu1 }
 0x48f   :  { %v2174_v50 = vadd.f32 %v2173_v31, %v2172_v28 }
 0x490   :  { %v2408_v61 = vpop.f32.mrb[8].mxu0 }
 0x491   :  { %v2175_v19 = vpop.f32.mrb[14].mxu1  ;;  %v2033_v0 = vpop.f32.mrb[9].mxu0 }
 0x492   :  { %v2176_v6 = vpop.f32.mrb[15].mxu1 }
 0x493   :  { %v2177_v25 = vadd.f32 %v2176_v6, %v2175_v19 }
 0x495   :  { %v2178_v13 = vpop.f32.mrb[16].mxu1 }
 0x496   :  { %v2179_v18 = vpop.f32.mrb[17].mxu1 }
 0x497   :  { %v2180_v10 = vadd.f32 %v2179_v18, %v2178_v13 }
 0x499   :  { %v2181_v12 = vpop.f32.mrb[18].mxu1 }
 0x49a   :  { %v2182_v49 = vpop.f32.mrb[19].mxu1 }
 0x49b   :  { %v2183_v22 = vadd.f32 %v2182_v49, %v2181_v12 }
 0x4ad   :  { %v2216_v29 = vpop.f32.mrb[20].mxu1 }
 0x4ae   :  { %v2217_v62 = vpop.f32.mrb[21].mxu1 }
 0x4af   :  { %v2218_v38 = vadd.f32 %v2217_v62, %v2216_v29 }
 0x4b1   :  { %v1779_v1 = vadd.f32 %v2218_v38, %v2174_v50  ;;  %v2219_v58 = vpop.f32.mrb[22].mxu1 }
 0x4b2   :  { %v2220_v42 = vpop.f32.mrb[23].mxu1 }
 0x4b3   :  { %v2221_v16 = vadd.f32 %v2220_v42, %v2219_v58 }
 0x4b5   :  { %v1784_v35 = vadd.f32 %v2221_v16, %v2177_v25  ;;  %v2222_v17 = vpop.f32.mrb[24].mxu1 }
 0x4b6   :  { %v2223_v53 = vpop.f32.mrb[25].mxu1 }
 0x4b7   :  { %v2224_v60 = vadd.f32 %v2223_v53, %v2222_v17 }
 0x4b9   :  { %v1789_v43 = vadd.f32 %v2224_v60, %v2180_v10  ;;  %v2225_v51 = vpop.f32.mrb[26].mxu1 }
 0x4ba   :  { %v2226_v2 = vpop.f32.mrb[27].mxu1 }
 0x4bb   :  { %v2227_v37 = vadd.f32 %v2226_v2, %v2225_v51 }
 0x4bd   :  { %v1794_v4 = vadd.f32 %v2227_v37, %v2183_v22 }
 0x4cd   :  { %v2260_v41 = vpop.f32.mrb[28].mxu1 }
 0x4ce   :  { %v2261_v5 = vpop.f32.mrb[29].mxu1 }
 0x4cf   :  { %v2262_v39 = vadd.f32 %v2261_v5, %v2260_v41 }
 0x4d1   :  { %v1864_v59 = vadd.f32 %v2262_v39, %v1779_v1  ;;  %v2263_v7 = vpop.f32.mrb[30].mxu1 }
 0x4d2   :  { %v2264_v57 = vpop.f32.mrb[31].mxu1 }
 0x4d3   :  { %v2265_v33 = vadd.f32 %v2264_v57, %v2263_v7 }
 0x4d5   :  { %v1869_v20 = vadd.f32 %v2265_v33, %v1784_v35  ;;  %v2266_v21 = vpop.f32.mrb[32].mxu1 }
 0x4d6   :  { %v2267_v40 = vpop.f32.mrb[33].mxu1 }
 0x4d7   :  { %v2268_v34 = vadd.f32 %v2267_v40, %v2266_v21 }
 0x4d9   :  { %v1874_v48 = vadd.f32 %v2268_v34, %v1789_v43  ;;  %v2269_v8 = vpop.f32.mrb[34].mxu1 }
 0x4da   :  { %v2270_v9 = vpop.f32.mrb[35].mxu1 }
 0x4db   :  { %v2271_v56 = vadd.f32 %v2270_v9, %v2269_v8 }
 0x4dd   :  { %v1879_v23 = vadd.f32 %v2271_v56, %v1794_v4 }
 0x4ed   :  { %v2304_v14 = vpop.f32.mrb[36].mxu1 }
 0x4ee   :  { %v2305_v24 = vpop.f32.mrb[37].mxu1 }
 0x4ef   :  { %v2306_v26 = vadd.f32 %v2305_v24, %v2304_v14 }
 0x4f1   :  { %v2307_v27 = vpop.f32.mrb[38].mxu1  ;;  %v1949_v11 = vadd.f32 %v2306_v26, %v1864_v59 }
 0x4f2   :  { %v2308_v36 = vpop.f32.mrb[39].mxu1 }
 0x4f3   :  { %v2309_v44 = vadd.f32 %v2308_v36, %v2307_v27  ;;  %v2034_v45 = vadd.f32 %v2033_v0, %v1949_v11 }
 0x4f5   :  { %v1954_v32 = vadd.f32 %v2309_v44, %v1869_v20  ;;  %2052 = vst [vmem:[%s5265_s5] sm:$0xff] %v2034_v45  ;;  %v2310_v54 = vpop.f32.mrb[40].mxu1 }
 0x4f6   :  { %v2311_v46 = vpop.f32.mrb[41].mxu1 }
 0x4f7   :  { %v2039_v47 = vadd.f32 %v2408_v61, %v1954_v32  ;;  %v2312_v52 = vadd.f32 %v2311_v46, %v2310_v54 }
 0x4f9   :  { %2053 = vst [vmem:[%s5265_s5 + $0x8] sm:$0xff] %v2039_v47  ;;  %v2313_v30 = vpop.f32.mrb[42].mxu1  ;;  %v1959_v63 = vadd.f32 %v2312_v52, %v1874_v48 }
 0x4fa   :  { %v2314_v15 = vpop.f32.mrb[43].mxu1 }
 0x4fb   :  { %v2315_v55 = vadd.f32 %v2314_v15, %v2313_v30 }
 0x4fd   :  { %v1964_v3 = vadd.f32 %v2315_v55, %v1879_v23 }
 0x50d   :  { %v2411_v28 = vpop.f32.mrb[44].mxu1 }
 0x50e   :  { %v2049_v31 = vadd.f32 %v2411_v28, %v1964_v3  ;;  %v2043_v50 = vpop.f32.mrb[45].mxu1 }
 0x50f   :  { %v2044_v19 = vadd.f32 %v2043_v50, %v1959_v63 }
 0x510   :  { %2055 = vst [vmem:[%s5265_s5 + $0x18] sm:$0xff] %v2049_v31 }
 0x511   :  { %2054 = vst [vmem:[%s5265_s5 + $0x10] sm:$0xff] %v2044_v19 }
 0x512   :  { %2060 = vsyncmov [#allocation3] }
 0x515   :  { %s2061_s10 = vpop.sfrf %2060 }
 0x516   :  { %p2119_p0 = scmp.ne.s32.totalorder %s2061_s10, 0 }
 0x518   :  { %2065 = shalt.err (%p2119_p0)  }

</bundles_post_ra>
